<compile_context>
chip_gen: v7x
topology: tpu7x:2x2x1
jax: 0.10.0
libtpu: 0.0.40
codegen_flags: <defaults>
</compile_context>

<pallas_src>
import math

import jax
import jax.numpy as jnp
from jax.experimental import pallas as pl
from jax.experimental.pallas import tpu as pltpu

# ---- small "config" consistent with BertAttention ----
B, S, H = 2, 8, 32          # batch, seq, hidden_size
NH = 4                      # num_attention_heads
HD = H // NH                # attention_head_size
LN_EPS = 1e-12              # layer_norm_eps


def _layer_norm(x, gamma, beta):
    mu = jnp.mean(x, axis=-1, keepdims=True)
    xc = x - mu
    var = jnp.mean(xc * xc, axis=-1, keepdims=True)
    return xc * jax.lax.rsqrt(var + jnp.float32(LN_EPS)) * gamma + beta


def bert_attention_kernel(x_ref, wq_ref, bq_ref, wk_ref, bk_ref, wv_ref, bv_ref,
                          wo_ref, bo_ref, g_ref, be_ref, out_ref, probs_ref):
    x = x_ref[...]                                   # (B*S, H) f32
    xb = x.astype(jnp.bfloat16)                      # shared bf16 MXU operand

    # BertSelfOutput accumulator: residual + dense bias; each head's output
    # projection is accumulated directly (no context scratch, no reload).
    acc = x + bo_ref[...]                            # (B*S, H) f32

    for h in range(NH):                              # NH=4 -> static unroll
        # Per-head Q/K/V projections.  Weight slabs were pre-split host-side,
        # so head selection is a free leading-dim index (no lane-offset slices
        # of a fused QKV result).  The 1/sqrt(HD) scale is folded into Wq/bq.
        q = (jnp.dot(xb, wq_ref[h], preferred_element_type=jnp.float32)
             + bq_ref[h]).reshape(B, S, HD)
        k = (jnp.dot(xb, wk_ref[h], preferred_element_type=jnp.float32)
             + bk_ref[h]).reshape(B, S, HD)
        v = (jnp.dot(xb, wv_ref[h], preferred_element_type=jnp.float32)
             + bv_ref[h]).reshape(B, S, HD)

        # Scores: contraction on the LAST dim of both operands (no .T / XLU).
        s = jnp.einsum("bqd,bkd->bqk",
                       q.astype(jnp.bfloat16), k.astype(jnp.bfloat16),
                       preferred_element_type=jnp.float32)        # (B, S, S)

        # Softmax in f32; exact divide (attention_probs is a module output).
        m = jnp.max(s, axis=-1, keepdims=True)
        e = jnp.exp(s - m)
        p = e / jnp.sum(e, axis=-1, keepdims=True)
        # attention-probs dropout -> identity (eval mode)
        probs_ref[h] = p                             # slab store, lane offset 0

        ctx = jnp.einsum("bqk,bkd->bqd",
                         p.astype(jnp.bfloat16), v.astype(jnp.bfloat16),
                         preferred_element_type=jnp.float32)      # (B, S, HD)

        # Output projection folded into the head loop (per-head Wo row block).
        acc = acc + jnp.dot(ctx.reshape(B * S, HD).astype(jnp.bfloat16),
                            wo_ref[h], preferred_element_type=jnp.float32)

    # hidden-states dropout -> identity (eval mode); LayerNorm in f32.
    out_ref[...] = _layer_norm(acc, g_ref[...], be_ref[...])      # single store


def bert_attention(hidden_states, params):
    """hidden_states: (B, S, H) f32.
    Returns (attention_output (B, S, H), attention_probs (B, NH, S, S))."""
    wq, bq, wk, bk, wv, bv, wo, bo, gamma, beta = params
    scale = 1.0 / math.sqrt(HD)

    def per_head_w(w):   # (H, H) -> (NH, H, HD), bf16 MXU operand
        return jnp.transpose(w.reshape(H, NH, HD), (1, 0, 2)).astype(jnp.bfloat16)

    def per_head_b(b):   # (1, H) -> (NH, 1, HD), kept f32 (added after the dot)
        return jnp.transpose(b.reshape(1, NH, HD), (1, 0, 2))

    # One-time weight prep (cached in a real model): fold score scale into Q,
    # split heads, cast matmul weights to bf16.
    wq_h = per_head_w(wq * scale)
    bq_h = per_head_b(bq * scale)
    wk_h, bk_h = per_head_w(wk), per_head_b(bk)
    wv_h, bv_h = per_head_w(wv), per_head_b(bv)
    wo_h = wo.reshape(NH, HD, H).astype(jnp.bfloat16)   # per-head Wo row blocks

    x2d = hidden_states.reshape(B * S, H)
    vmem = pl.BlockSpec(memory_space=pltpu.MemorySpace.VMEM)

    out2d, probs = pl.pallas_call(
        bert_attention_kernel,
        out_shape=(
            jax.ShapeDtypeStruct((B * S, H), jnp.float32),      # attention_output slab
            jax.ShapeDtypeStruct((NH, B, S, S), jnp.float32),   # attention_probs slab
        ),
        in_specs=[vmem] * 11,
        out_specs=(vmem, vmem),
    )(x2d, wq_h, bq_h, wk_h, bk_h, wv_h, bv_h, wo_h, bo, gamma, beta)

    attention_output = out2d.reshape(B, S, H)
    attention_probs = jnp.transpose(probs, (1, 0, 2, 3))        # (B, NH, S, S)
    return attention_output, attention_probs


def _reference(x, params):
    """Pure-JAX f32 reference of the same BertAttention forward (sanity check)."""
    wq, bq, wk, bk, wv, bv, wo, bo, gamma, beta = params
    q = x @ wq + bq[0]
    k = x @ wk + bk[0]
    v = x @ wv + bv[0]
    qh = q.reshape(B, S, NH, HD).transpose(0, 2, 1, 3)
    kh = k.reshape(B, S, NH, HD).transpose(0, 2, 1, 3)
    vh = v.reshape(B, S, NH, HD).transpose(0, 2, 1, 3)
    scores = jnp.einsum("bhqd,bhkd->bhqk", qh, kh) / math.sqrt(HD)
    probs = jax.nn.softmax(scores, axis=-1)
    ctx = jnp.einsum("bhqk,bhkd->bhqd", probs, vh).transpose(0, 2, 1, 3).reshape(B, S, H)
    attn = ctx @ wo + bo[0]
    y = _layer_norm(attn + x, gamma[0], beta[0])
    return y, probs


def make_params(key):
    ks = jax.random.split(key, 6)
    std = 0.02
    wq = std * jax.random.normal(ks[0], (H, H), jnp.float32)
    wk = std * jax.random.normal(ks[1], (H, H), jnp.float32)
    wv = std * jax.random.normal(ks[2], (H, H), jnp.float32)
    wo = std * jax.random.normal(ks[3], (H, H), jnp.float32)
    bq = 0.01 * jax.random.normal(ks[4], (1, H), jnp.float32)
    bk = jnp.zeros((1, H), jnp.float32)
    bv = 0.01 * jax.random.normal(ks[5], (1, H), jnp.float32)
    bo = jnp.zeros((1, H), jnp.float32)
    gamma = jnp.ones((1, H), jnp.float32)
    beta = jnp.zeros((1, H), jnp.float32)
    return (wq, bq, wk, bk, wv, bv, wo, bo, gamma, beta)


if __name__ == "__main__":
    key = jax.random.PRNGKey(0)
    kx, kp = jax.random.split(key)
    x = jax.random.normal(kx, (B, S, H), jnp.float32)
    params = make_params(kp)

    y, probs = bert_attention(x, params)
    y = jax.block_until_ready(y)
    probs = jax.block_until_ready(probs)

    y_ref, p_ref = _reference(x, params)
    # bf16 MXU operands (f32 accumulate) introduce ~1e-4-level deviations vs the
    # pure-f32 reference; real bugs would be off by O(0.1+).
    assert jnp.allclose(probs, p_ref, atol=2e-3, rtol=1e-2), "attention_probs mismatch"
    assert jnp.allclose(y, y_ref, atol=5e-3, rtol=1e-2), "attention_output mismatch"

    print("KERNEL_OK")
</pallas_src>

<mosaic_0001>
module attributes {stable_mosaic.version = 11 : i64} {
  func.func @bert_attention_kernel(%arg0: memref<16x32xf32, #tpu.memory_space<vmem>>, %arg1: memref<4x32x8xbf16, #tpu.memory_space<vmem>>, %arg2: memref<4x1x8xf32, #tpu.memory_space<vmem>>, %arg3: memref<4x32x8xbf16, #tpu.memory_space<vmem>>, %arg4: memref<4x1x8xf32, #tpu.memory_space<vmem>>, %arg5: memref<4x32x8xbf16, #tpu.memory_space<vmem>>, %arg6: memref<4x1x8xf32, #tpu.memory_space<vmem>>, %arg7: memref<4x8x32xbf16, #tpu.memory_space<vmem>>, %arg8: memref<1x32xf32, #tpu.memory_space<vmem>>, %arg9: memref<1x32xf32, #tpu.memory_space<vmem>>, %arg10: memref<1x32xf32, #tpu.memory_space<vmem>>, %arg11: memref<16x32xf32, #tpu.memory_space<vmem>>, %arg12: memref<4x2x8x8xf32, #tpu.memory_space<vmem>>) attributes {dimension_semantics = [], scalar_prefetch = 0 : i64, scratch_operands = 0 : i64, tpu.core_type = #tpu.core_type<tc>} {
    %c0 = arith.constant 0 : index
    %c0_0 = arith.constant 0 : index
    %0 = vector.load %arg0[%c0, %c0_0] : memref<16x32xf32, #tpu.memory_space<vmem>>, vector<16x32xf32>
    %1 = arith.truncf %0 : vector<16x32xf32> to vector<16x32xbf16>
    %c0_1 = arith.constant 0 : index
    %c0_2 = arith.constant 0 : index
    %2 = vector.load %arg8[%c0_1, %c0_2] : memref<1x32xf32, #tpu.memory_space<vmem>>, vector<1x32xf32>
    %3 = vector.broadcast %2 : vector<1x32xf32> to vector<16x32xf32>
    %4 = arith.addf %0, %3 : vector<16x32xf32>
    %c0_3 = arith.constant 0 : index
    %c0_4 = arith.constant 0 : index
    %c0_5 = arith.constant 0 : index
    %5 = vector.load %arg1[%c0_3, %c0_4, %c0_5] : memref<4x32x8xbf16, #tpu.memory_space<vmem>>, vector<1x32x8xbf16>
    %6 = vector.shape_cast %5 : vector<1x32x8xbf16> to vector<32x8xbf16>
    %cst = arith.constant dense<0.000000e+00> : vector<16x8xf32>
    %7 = tpu.matmul %1, %6, %cst {dimension_numbers = #tpu.dot_dimension_numbers<[1], [0], [0], [1], [0, 0, 1, 1], [], []>} : vector<16x32xbf16>, vector<32x8xbf16>, vector<16x8xf32> -> vector<16x8xf32>
    %c0_6 = arith.constant 0 : index
    %c0_7 = arith.constant 0 : index
    %c0_8 = arith.constant 0 : index
    %8 = vector.load %arg2[%c0_6, %c0_7, %c0_8] : memref<4x1x8xf32, #tpu.memory_space<vmem>>, vector<1x1x8xf32>
    %9 = vector.shape_cast %8 : vector<1x1x8xf32> to vector<1x8xf32>
    %10 = vector.broadcast %9 : vector<1x8xf32> to vector<16x8xf32>
    %11 = arith.addf %7, %10 : vector<16x8xf32>
    %12 = vector.shape_cast %11 : vector<16x8xf32> to vector<2x8x8xf32>
    %c0_9 = arith.constant 0 : index
    %c0_10 = arith.constant 0 : index
    %c0_11 = arith.constant 0 : index
    %13 = vector.load %arg3[%c0_9, %c0_10, %c0_11] : memref<4x32x8xbf16, #tpu.memory_space<vmem>>, vector<1x32x8xbf16>
    %14 = vector.shape_cast %13 : vector<1x32x8xbf16> to vector<32x8xbf16>
    %cst_12 = arith.constant dense<0.000000e+00> : vector<16x8xf32>
    %15 = tpu.matmul %1, %14, %cst_12 {dimension_numbers = #tpu.dot_dimension_numbers<[1], [0], [0], [1], [0, 0, 1, 1], [], []>} : vector<16x32xbf16>, vector<32x8xbf16>, vector<16x8xf32> -> vector<16x8xf32>
    %c0_13 = arith.constant 0 : index
    %c0_14 = arith.constant 0 : index
    %c0_15 = arith.constant 0 : index
    %16 = vector.load %arg4[%c0_13, %c0_14, %c0_15] : memref<4x1x8xf32, #tpu.memory_space<vmem>>, vector<1x1x8xf32>
    %17 = vector.shape_cast %16 : vector<1x1x8xf32> to vector<1x8xf32>
    %18 = vector.broadcast %17 : vector<1x8xf32> to vector<16x8xf32>
    %19 = arith.addf %15, %18 : vector<16x8xf32>
    %20 = vector.shape_cast %19 : vector<16x8xf32> to vector<2x8x8xf32>
    %c0_16 = arith.constant 0 : index
    %c0_17 = arith.constant 0 : index
    %c0_18 = arith.constant 0 : index
    %21 = vector.load %arg5[%c0_16, %c0_17, %c0_18] : memref<4x32x8xbf16, #tpu.memory_space<vmem>>, vector<1x32x8xbf16>
    %22 = vector.shape_cast %21 : vector<1x32x8xbf16> to vector<32x8xbf16>
    %cst_19 = arith.constant dense<0.000000e+00> : vector<16x8xf32>
    %23 = tpu.matmul %1, %22, %cst_19 {dimension_numbers = #tpu.dot_dimension_numbers<[1], [0], [0], [1], [0, 0, 1, 1], [], []>} : vector<16x32xbf16>, vector<32x8xbf16>, vector<16x8xf32> -> vector<16x8xf32>
    %c0_20 = arith.constant 0 : index
    %c0_21 = arith.constant 0 : index
    %c0_22 = arith.constant 0 : index
    %24 = vector.load %arg6[%c0_20, %c0_21, %c0_22] : memref<4x1x8xf32, #tpu.memory_space<vmem>>, vector<1x1x8xf32>
    %25 = vector.shape_cast %24 : vector<1x1x8xf32> to vector<1x8xf32>
    %26 = vector.broadcast %25 : vector<1x8xf32> to vector<16x8xf32>
    %27 = arith.addf %23, %26 : vector<16x8xf32>
    %28 = vector.shape_cast %27 : vector<16x8xf32> to vector<2x8x8xf32>
    %29 = arith.truncf %12 : vector<2x8x8xf32> to vector<2x8x8xbf16>
    %30 = arith.truncf %20 : vector<2x8x8xf32> to vector<2x8x8xbf16>
    "tpu.trace_start"() <{level = 10 : i32, message = "bqd,bkd->bqk"}> : () -> ()
    %cst_23 = arith.constant dense<0.000000e+00> : vector<2x8x8xf32>
    %31 = tpu.matmul %29, %30, %cst_23 {dimension_numbers = #tpu.dot_dimension_numbers<[2], [2], [1], [1], [0, 0, 0, 1, 1, 1], [0], [0]>} : vector<2x8x8xbf16>, vector<2x8x8xbf16>, vector<2x8x8xf32> -> vector<2x8x8xf32>
    "tpu.trace_stop"() : () -> ()
    %cst_24 = arith.constant dense<0xFF800000> : vector<2x8xf32>
    %32 = vector.multi_reduction <maximumf>, %31, %cst_24 [2] : vector<2x8x8xf32> to vector<2x8xf32>
    %33 = vector.shape_cast %32 : vector<2x8xf32> to vector<2x8x1xf32>
    %34 = vector.broadcast %33 : vector<2x8x1xf32> to vector<2x8x8xf32>
    %35 = arith.subf %31, %34 : vector<2x8x8xf32>
    %36 = math.exp %35 : vector<2x8x8xf32>
    %cst_25 = arith.constant dense<0.000000e+00> : vector<2x8xf32>
    %37 = vector.multi_reduction <add>, %36, %cst_25 [2] : vector<2x8x8xf32> to vector<2x8xf32>
    %38 = vector.shape_cast %37 : vector<2x8xf32> to vector<2x8x1xf32>
    %39 = vector.broadcast %38 : vector<2x8x1xf32> to vector<2x8x8xf32>
    %40 = arith.divf %36, %39 : vector<2x8x8xf32>
    %c0_26 = arith.constant 0 : index
    %c0_27 = arith.constant 0 : index
    %c0_28 = arith.constant 0 : index
    %c0_29 = arith.constant 0 : index
    %41 = vector.load %arg12[%c0_26, %c0_27, %c0_28, %c0_29] : memref<4x2x8x8xf32, #tpu.memory_space<vmem>>, vector<1x2x8x8xf32>
    %42 = vector.shape_cast %41 : vector<1x2x8x8xf32> to vector<2x8x8xf32>
    %43 = vector.shape_cast %40 : vector<2x8x8xf32> to vector<1x2x8x8xf32>
    tpu.vector_store %arg12[%c0_26, %c0_27, %c0_28, %c0_29], %43 {strides = array<i32>} : memref<4x2x8x8xf32, #tpu.memory_space<vmem>>, vector<1x2x8x8xf32>,
    %44 = arith.truncf %40 : vector<2x8x8xf32> to vector<2x8x8xbf16>
    %45 = arith.truncf %28 : vector<2x8x8xf32> to vector<2x8x8xbf16>
    "tpu.trace_start"() <{level = 10 : i32, message = "bqk,bkd->bqd"}> : () -> ()
    %cst_30 = arith.constant dense<0.000000e+00> : vector<2x8x8xf32>
    %46 = tpu.matmul %44, %45, %cst_30 {dimension_numbers = #tpu.dot_dimension_numbers<[2], [1], [1], [2], [0, 0, 0, 1, 1, 2], [0], [0]>} : vector<2x8x8xbf16>, vector<2x8x8xbf16>, vector<2x8x8xf32> -> vector<2x8x8xf32>
    "tpu.trace_stop"() : () -> ()
    %47 = vector.shape_cast %46 : vector<2x8x8xf32> to vector<16x8xf32>
    %48 = arith.truncf %47 : vector<16x8xf32> to vector<16x8xbf16>
    %c0_31 = arith.constant 0 : index
    %c0_32 = arith.constant 0 : index
    %c0_33 = arith.constant 0 : index
    %49 = vector.load %arg7[%c0_31, %c0_32, %c0_33] : memref<4x8x32xbf16, #tpu.memory_space<vmem>>, vector<1x8x32xbf16>
    %50 = vector.shape_cast %49 : vector<1x8x32xbf16> to vector<8x32xbf16>
    %cst_34 = arith.constant dense<0.000000e+00> : vector<16x32xf32>
    %51 = tpu.matmul %48, %50, %cst_34 {dimension_numbers = #tpu.dot_dimension_numbers<[1], [0], [0], [1], [0, 0, 1, 1], [], []>} : vector<16x8xbf16>, vector<8x32xbf16>, vector<16x32xf32> -> vector<16x32xf32>
    %52 = arith.addf %4, %51 : vector<16x32xf32>
    %c1 = arith.constant 1 : index
    %c0_35 = arith.constant 0 : index
    %c0_36 = arith.constant 0 : index
    %53 = vector.load %arg1[%c1, %c0_35, %c0_36] : memref<4x32x8xbf16, #tpu.memory_space<vmem>>, vector<1x32x8xbf16>
    %54 = vector.shape_cast %53 : vector<1x32x8xbf16> to vector<32x8xbf16>
    %cst_37 = arith.constant dense<0.000000e+00> : vector<16x8xf32>
    %55 = tpu.matmul %1, %54, %cst_37 {dimension_numbers = #tpu.dot_dimension_numbers<[1], [0], [0], [1], [0, 0, 1, 1], [], []>} : vector<16x32xbf16>, vector<32x8xbf16>, vector<16x8xf32> -> vector<16x8xf32>
    %c1_38 = arith.constant 1 : index
    %c0_39 = arith.constant 0 : index
    %c0_40 = arith.constant 0 : index
    %56 = vector.load %arg2[%c1_38, %c0_39, %c0_40] : memref<4x1x8xf32, #tpu.memory_space<vmem>>, vector<1x1x8xf32>
    %57 = vector.shape_cast %56 : vector<1x1x8xf32> to vector<1x8xf32>
    %58 = vector.broadcast %57 : vector<1x8xf32> to vector<16x8xf32>
    %59 = arith.addf %55, %58 : vector<16x8xf32>
    %60 = vector.shape_cast %59 : vector<16x8xf32> to vector<2x8x8xf32>
    %c1_41 = arith.constant 1 : index
    %c0_42 = arith.constant 0 : index
    %c0_43 = arith.constant 0 : index
    %61 = vector.load %arg3[%c1_41, %c0_42, %c0_43] : memref<4x32x8xbf16, #tpu.memory_space<vmem>>, vector<1x32x8xbf16>
    %62 = vector.shape_cast %61 : vector<1x32x8xbf16> to vector<32x8xbf16>
    %cst_44 = arith.constant dense<0.000000e+00> : vector<16x8xf32>
    %63 = tpu.matmul %1, %62, %cst_44 {dimension_numbers = #tpu.dot_dimension_numbers<[1], [0], [0], [1], [0, 0, 1, 1], [], []>} : vector<16x32xbf16>, vector<32x8xbf16>, vector<16x8xf32> -> vector<16x8xf32>
    %c1_45 = arith.constant 1 : index
    %c0_46 = arith.constant 0 : index
    %c0_47 = arith.constant 0 : index
    %64 = vector.load %arg4[%c1_45, %c0_46, %c0_47] : memref<4x1x8xf32, #tpu.memory_space<vmem>>, vector<1x1x8xf32>
    %65 = vector.shape_cast %64 : vector<1x1x8xf32> to vector<1x8xf32>
    %66 = vector.broadcast %65 : vector<1x8xf32> to vector<16x8xf32>
    %67 = arith.addf %63, %66 : vector<16x8xf32>
    %68 = vector.shape_cast %67 : vector<16x8xf32> to vector<2x8x8xf32>
    %c1_48 = arith.constant 1 : index
    %c0_49 = arith.constant 0 : index
    %c0_50 = arith.constant 0 : index
    %69 = vector.load %arg5[%c1_48, %c0_49, %c0_50] : memref<4x32x8xbf16, #tpu.memory_space<vmem>>, vector<1x32x8xbf16>
    %70 = vector.shape_cast %69 : vector<1x32x8xbf16> to vector<32x8xbf16>
    %cst_51 = arith.constant dense<0.000000e+00> : vector<16x8xf32>
    %71 = tpu.matmul %1, %70, %cst_51 {dimension_numbers = #tpu.dot_dimension_numbers<[1], [0], [0], [1], [0, 0, 1, 1], [], []>} : vector<16x32xbf16>, vector<32x8xbf16>, vector<16x8xf32> -> vector<16x8xf32>
    %c1_52 = arith.constant 1 : index
    %c0_53 = arith.constant 0 : index
    %c0_54 = arith.constant 0 : index
    %72 = vector.load %arg6[%c1_52, %c0_53, %c0_54] : memref<4x1x8xf32, #tpu.memory_space<vmem>>, vector<1x1x8xf32>
    %73 = vector.shape_cast %72 : vector<1x1x8xf32> to vector<1x8xf32>
    %74 = vector.broadcast %73 : vector<1x8xf32> to vector<16x8xf32>
    %75 = arith.addf %71, %74 : vector<16x8xf32>
    %76 = vector.shape_cast %75 : vector<16x8xf32> to vector<2x8x8xf32>
    %77 = arith.truncf %60 : vector<2x8x8xf32> to vector<2x8x8xbf16>
    %78 = arith.truncf %68 : vector<2x8x8xf32> to vector<2x8x8xbf16>
    "tpu.trace_start"() <{level = 10 : i32, message = "bqd,bkd->bqk"}> : () -> ()
    %cst_55 = arith.constant dense<0.000000e+00> : vector<2x8x8xf32>
    %79 = tpu.matmul %77, %78, %cst_55 {dimension_numbers = #tpu.dot_dimension_numbers<[2], [2], [1], [1], [0, 0, 0, 1, 1, 1], [0], [0]>} : vector<2x8x8xbf16>, vector<2x8x8xbf16>, vector<2x8x8xf32> -> vector<2x8x8xf32>
    "tpu.trace_stop"() : () -> ()
    %cst_56 = arith.constant dense<0xFF800000> : vector<2x8xf32>
    %80 = vector.multi_reduction <maximumf>, %79, %cst_56 [2] : vector<2x8x8xf32> to vector<2x8xf32>
    %81 = vector.shape_cast %80 : vector<2x8xf32> to vector<2x8x1xf32>
    %82 = vector.broadcast %81 : vector<2x8x1xf32> to vector<2x8x8xf32>
    %83 = arith.subf %79, %82 : vector<2x8x8xf32>
    %84 = math.exp %83 : vector<2x8x8xf32>
    %cst_57 = arith.constant dense<0.000000e+00> : vector<2x8xf32>
    %85 = vector.multi_reduction <add>, %84, %cst_57 [2] : vector<2x8x8xf32> to vector<2x8xf32>
    %86 = vector.shape_cast %85 : vector<2x8xf32> to vector<2x8x1xf32>
    %87 = vector.broadcast %86 : vector<2x8x1xf32> to vector<2x8x8xf32>
    %88 = arith.divf %84, %87 : vector<2x8x8xf32>
    %c1_58 = arith.constant 1 : index
    %c0_59 = arith.constant 0 : index
    %c0_60 = arith.constant 0 : index
    %c0_61 = arith.constant 0 : index
    %89 = vector.load %arg12[%c1_58, %c0_59, %c0_60, %c0_61] : memref<4x2x8x8xf32, #tpu.memory_space<vmem>>, vector<1x2x8x8xf32>
    %90 = vector.shape_cast %89 : vector<1x2x8x8xf32> to vector<2x8x8xf32>
    %91 = vector.shape_cast %88 : vector<2x8x8xf32> to vector<1x2x8x8xf32>
    tpu.vector_store %arg12[%c1_58, %c0_59, %c0_60, %c0_61], %91 {strides = array<i32>} : memref<4x2x8x8xf32, #tpu.memory_space<vmem>>, vector<1x2x8x8xf32>,
    %92 = arith.truncf %88 : vector<2x8x8xf32> to vector<2x8x8xbf16>
    %93 = arith.truncf %76 : vector<2x8x8xf32> to vector<2x8x8xbf16>
    "tpu.trace_start"() <{level = 10 : i32, message = "bqk,bkd->bqd"}> : () -> ()
    %cst_62 = arith.constant dense<0.000000e+00> : vector<2x8x8xf32>
    %94 = tpu.matmul %92, %93, %cst_62 {dimension_numbers = #tpu.dot_dimension_numbers<[2], [1], [1], [2], [0, 0, 0, 1, 1, 2], [0], [0]>} : vector<2x8x8xbf16>, vector<2x8x8xbf16>, vector<2x8x8xf32> -> vector<2x8x8xf32>
    "tpu.trace_stop"() : () -> ()
    %95 = vector.shape_cast %94 : vector<2x8x8xf32> to vector<16x8xf32>
    %96 = arith.truncf %95 : vector<16x8xf32> to vector<16x8xbf16>
    %c1_63 = arith.constant 1 : index
    %c0_64 = arith.constant 0 : index
    %c0_65 = arith.constant 0 : index
    %97 = vector.load %arg7[%c1_63, %c0_64, %c0_65] : memref<4x8x32xbf16, #tpu.memory_space<vmem>>, vector<1x8x32xbf16>
    %98 = vector.shape_cast %97 : vector<1x8x32xbf16> to vector<8x32xbf16>
    %cst_66 = arith.constant dense<0.000000e+00> : vector<16x32xf32>
    %99 = tpu.matmul %96, %98, %cst_66 {dimension_numbers = #tpu.dot_dimension_numbers<[1], [0], [0], [1], [0, 0, 1, 1], [], []>} : vector<16x8xbf16>, vector<8x32xbf16>, vector<16x32xf32> -> vector<16x32xf32>
    %100 = arith.addf %52, %99 : vector<16x32xf32>
    %c2 = arith.constant 2 : index
    %c0_67 = arith.constant 0 : index
    %c0_68 = arith.constant 0 : index
    %101 = vector.load %arg1[%c2, %c0_67, %c0_68] : memref<4x32x8xbf16, #tpu.memory_space<vmem>>, vector<1x32x8xbf16>
    %102 = vector.shape_cast %101 : vector<1x32x8xbf16> to vector<32x8xbf16>
    %cst_69 = arith.constant dense<0.000000e+00> : vector<16x8xf32>
    %103 = tpu.matmul %1, %102, %cst_69 {dimension_numbers = #tpu.dot_dimension_numbers<[1], [0], [0], [1], [0, 0, 1, 1], [], []>} : vector<16x32xbf16>, vector<32x8xbf16>, vector<16x8xf32> -> vector<16x8xf32>
    %c2_70 = arith.constant 2 : index
    %c0_71 = arith.constant 0 : index
    %c0_72 = arith.constant 0 : index
    %104 = vector.load %arg2[%c2_70, %c0_71, %c0_72] : memref<4x1x8xf32, #tpu.memory_space<vmem>>, vector<1x1x8xf32>
    %105 = vector.shape_cast %104 : vector<1x1x8xf32> to vector<1x8xf32>
    %106 = vector.broadcast %105 : vector<1x8xf32> to vector<16x8xf32>
    %107 = arith.addf %103, %106 : vector<16x8xf32>
    %108 = vector.shape_cast %107 : vector<16x8xf32> to vector<2x8x8xf32>
    %c2_73 = arith.constant 2 : index
    %c0_74 = arith.constant 0 : index
    %c0_75 = arith.constant 0 : index
    %109 = vector.load %arg3[%c2_73, %c0_74, %c0_75] : memref<4x32x8xbf16, #tpu.memory_space<vmem>>, vector<1x32x8xbf16>
    %110 = vector.shape_cast %109 : vector<1x32x8xbf16> to vector<32x8xbf16>
    %cst_76 = arith.constant dense<0.000000e+00> : vector<16x8xf32>
    %111 = tpu.matmul %1, %110, %cst_76 {dimension_numbers = #tpu.dot_dimension_numbers<[1], [0], [0], [1], [0, 0, 1, 1], [], []>} : vector<16x32xbf16>, vector<32x8xbf16>, vector<16x8xf32> -> vector<16x8xf32>
    %c2_77 = arith.constant 2 : index
    %c0_78 = arith.constant 0 : index
    %c0_79 = arith.constant 0 : index
    %112 = vector.load %arg4[%c2_77, %c0_78, %c0_79] : memref<4x1x8xf32, #tpu.memory_space<vmem>>, vector<1x1x8xf32>
    %113 = vector.shape_cast %112 : vector<1x1x8xf32> to vector<1x8xf32>
    %114 = vector.broadcast %113 : vector<1x8xf32> to vector<16x8xf32>
    %115 = arith.addf %111, %114 : vector<16x8xf32>
    %116 = vector.shape_cast %115 : vector<16x8xf32> to vector<2x8x8xf32>
    %c2_80 = arith.constant 2 : index
    %c0_81 = arith.constant 0 : index
    %c0_82 = arith.constant 0 : index
    %117 = vector.load %arg5[%c2_80, %c0_81, %c0_82] : memref<4x32x8xbf16, #tpu.memory_space<vmem>>, vector<1x32x8xbf16>
    %118 = vector.shape_cast %117 : vector<1x32x8xbf16> to vector<32x8xbf16>
    %cst_83 = arith.constant dense<0.000000e+00> : vector<16x8xf32>
    %119 = tpu.matmul %1, %118, %cst_83 {dimension_numbers = #tpu.dot_dimension_numbers<[1], [0], [0], [1], [0, 0, 1, 1], [], []>} : vector<16x32xbf16>, vector<32x8xbf16>, vector<16x8xf32> -> vector<16x8xf32>
    %c2_84 = arith.constant 2 : index
    %c0_85 = arith.constant 0 : index
    %c0_86 = arith.constant 0 : index
    %120 = vector.load %arg6[%c2_84, %c0_85, %c0_86] : memref<4x1x8xf32, #tpu.memory_space<vmem>>, vector<1x1x8xf32>
    %121 = vector.shape_cast %120 : vector<1x1x8xf32> to vector<1x8xf32>
    %122 = vector.broadcast %121 : vector<1x8xf32> to vector<16x8xf32>
    %123 = arith.addf %119, %122 : vector<16x8xf32>
    %124 = vector.shape_cast %123 : vector<16x8xf32> to vector<2x8x8xf32>
    %125 = arith.truncf %108 : vector<2x8x8xf32> to vector<2x8x8xbf16>
    %126 = arith.truncf %116 : vector<2x8x8xf32> to vector<2x8x8xbf16>
    "tpu.trace_start"() <{level = 10 : i32, message = "bqd,bkd->bqk"}> : () -> ()
    %cst_87 = arith.constant dense<0.000000e+00> : vector<2x8x8xf32>
    %127 = tpu.matmul %125, %126, %cst_87 {dimension_numbers = #tpu.dot_dimension_numbers<[2], [2], [1], [1], [0, 0, 0, 1, 1, 1], [0], [0]>} : vector<2x8x8xbf16>, vector<2x8x8xbf16>, vector<2x8x8xf32> -> vector<2x8x8xf32>
    "tpu.trace_stop"() : () -> ()
    %cst_88 = arith.constant dense<0xFF800000> : vector<2x8xf32>
    %128 = vector.multi_reduction <maximumf>, %127, %cst_88 [2] : vector<2x8x8xf32> to vector<2x8xf32>
    %129 = vector.shape_cast %128 : vector<2x8xf32> to vector<2x8x1xf32>
    %130 = vector.broadcast %129 : vector<2x8x1xf32> to vector<2x8x8xf32>
    %131 = arith.subf %127, %130 : vector<2x8x8xf32>
    %132 = math.exp %131 : vector<2x8x8xf32>
    %cst_89 = arith.constant dense<0.000000e+00> : vector<2x8xf32>
    %133 = vector.multi_reduction <add>, %132, %cst_89 [2] : vector<2x8x8xf32> to vector<2x8xf32>
    %134 = vector.shape_cast %133 : vector<2x8xf32> to vector<2x8x1xf32>
    %135 = vector.broadcast %134 : vector<2x8x1xf32> to vector<2x8x8xf32>
    %136 = arith.divf %132, %135 : vector<2x8x8xf32>
    %c2_90 = arith.constant 2 : index
    %c0_91 = arith.constant 0 : index
    %c0_92 = arith.constant 0 : index
    %c0_93 = arith.constant 0 : index
    %137 = vector.load %arg12[%c2_90, %c0_91, %c0_92, %c0_93] : memref<4x2x8x8xf32, #tpu.memory_space<vmem>>, vector<1x2x8x8xf32>
    %138 = vector.shape_cast %137 : vector<1x2x8x8xf32> to vector<2x8x8xf32>
    %139 = vector.shape_cast %136 : vector<2x8x8xf32> to vector<1x2x8x8xf32>
    tpu.vector_store %arg12[%c2_90, %c0_91, %c0_92, %c0_93], %139 {strides = array<i32>} : memref<4x2x8x8xf32, #tpu.memory_space<vmem>>, vector<1x2x8x8xf32>,
    %140 = arith.truncf %136 : vector<2x8x8xf32> to vector<2x8x8xbf16>
    %141 = arith.truncf %124 : vector<2x8x8xf32> to vector<2x8x8xbf16>
    "tpu.trace_start"() <{level = 10 : i32, message = "bqk,bkd->bqd"}> : () -> ()
    %cst_94 = arith.constant dense<0.000000e+00> : vector<2x8x8xf32>
    %142 = tpu.matmul %140, %141, %cst_94 {dimension_numbers = #tpu.dot_dimension_numbers<[2], [1], [1], [2], [0, 0, 0, 1, 1, 2], [0], [0]>} : vector<2x8x8xbf16>, vector<2x8x8xbf16>, vector<2x8x8xf32> -> vector<2x8x8xf32>
    "tpu.trace_stop"() : () -> ()
    %143 = vector.shape_cast %142 : vector<2x8x8xf32> to vector<16x8xf32>
    %144 = arith.truncf %143 : vector<16x8xf32> to vector<16x8xbf16>
    %c2_95 = arith.constant 2 : index
    %c0_96 = arith.constant 0 : index
    %c0_97 = arith.constant 0 : index
    %145 = vector.load %arg7[%c2_95, %c0_96, %c0_97] : memref<4x8x32xbf16, #tpu.memory_space<vmem>>, vector<1x8x32xbf16>
    %146 = vector.shape_cast %145 : vector<1x8x32xbf16> to vector<8x32xbf16>
    %cst_98 = arith.constant dense<0.000000e+00> : vector<16x32xf32>
    %147 = tpu.matmul %144, %146, %cst_98 {dimension_numbers = #tpu.dot_dimension_numbers<[1], [0], [0], [1], [0, 0, 1, 1], [], []>} : vector<16x8xbf16>, vector<8x32xbf16>, vector<16x32xf32> -> vector<16x32xf32>
    %148 = arith.addf %100, %147 : vector<16x32xf32>
    %c3 = arith.constant 3 : index
    %c0_99 = arith.constant 0 : index
    %c0_100 = arith.constant 0 : index
    %149 = vector.load %arg1[%c3, %c0_99, %c0_100] : memref<4x32x8xbf16, #tpu.memory_space<vmem>>, vector<1x32x8xbf16>
    %150 = vector.shape_cast %149 : vector<1x32x8xbf16> to vector<32x8xbf16>
    %cst_101 = arith.constant dense<0.000000e+00> : vector<16x8xf32>
    %151 = tpu.matmul %1, %150, %cst_101 {dimension_numbers = #tpu.dot_dimension_numbers<[1], [0], [0], [1], [0, 0, 1, 1], [], []>} : vector<16x32xbf16>, vector<32x8xbf16>, vector<16x8xf32> -> vector<16x8xf32>
    %c3_102 = arith.constant 3 : index
    %c0_103 = arith.constant 0 : index
    %c0_104 = arith.constant 0 : index
    %152 = vector.load %arg2[%c3_102, %c0_103, %c0_104] : memref<4x1x8xf32, #tpu.memory_space<vmem>>, vector<1x1x8xf32>
    %153 = vector.shape_cast %152 : vector<1x1x8xf32> to vector<1x8xf32>
    %154 = vector.broadcast %153 : vector<1x8xf32> to vector<16x8xf32>
    %155 = arith.addf %151, %154 : vector<16x8xf32>
    %156 = vector.shape_cast %155 : vector<16x8xf32> to vector<2x8x8xf32>
    %c3_105 = arith.constant 3 : index
    %c0_106 = arith.constant 0 : index
    %c0_107 = arith.constant 0 : index
    %157 = vector.load %arg3[%c3_105, %c0_106, %c0_107] : memref<4x32x8xbf16, #tpu.memory_space<vmem>>, vector<1x32x8xbf16>
    %158 = vector.shape_cast %157 : vector<1x32x8xbf16> to vector<32x8xbf16>
    %cst_108 = arith.constant dense<0.000000e+00> : vector<16x8xf32>
    %159 = tpu.matmul %1, %158, %cst_108 {dimension_numbers = #tpu.dot_dimension_numbers<[1], [0], [0], [1], [0, 0, 1, 1], [], []>} : vector<16x32xbf16>, vector<32x8xbf16>, vector<16x8xf32> -> vector<16x8xf32>
    %c3_109 = arith.constant 3 : index
    %c0_110 = arith.constant 0 : index
    %c0_111 = arith.constant 0 : index
    %160 = vector.load %arg4[%c3_109, %c0_110, %c0_111] : memref<4x1x8xf32, #tpu.memory_space<vmem>>, vector<1x1x8xf32>
    %161 = vector.shape_cast %160 : vector<1x1x8xf32> to vector<1x8xf32>
    %162 = vector.broadcast %161 : vector<1x8xf32> to vector<16x8xf32>
    %163 = arith.addf %159, %162 : vector<16x8xf32>
    %164 = vector.shape_cast %163 : vector<16x8xf32> to vector<2x8x8xf32>
    %c3_112 = arith.constant 3 : index
    %c0_113 = arith.constant 0 : index
    %c0_114 = arith.constant 0 : index
    %165 = vector.load %arg5[%c3_112, %c0_113, %c0_114] : memref<4x32x8xbf16, #tpu.memory_space<vmem>>, vector<1x32x8xbf16>
    %166 = vector.shape_cast %165 : vector<1x32x8xbf16> to vector<32x8xbf16>
    %cst_115 = arith.constant dense<0.000000e+00> : vector<16x8xf32>
    %167 = tpu.matmul %1, %166, %cst_115 {dimension_numbers = #tpu.dot_dimension_numbers<[1], [0], [0], [1], [0, 0, 1, 1], [], []>} : vector<16x32xbf16>, vector<32x8xbf16>, vector<16x8xf32> -> vector<16x8xf32>
    %c3_116 = arith.constant 3 : index
    %c0_117 = arith.constant 0 : index
    %c0_118 = arith.constant 0 : index
    %168 = vector.load %arg6[%c3_116, %c0_117, %c0_118] : memref<4x1x8xf32, #tpu.memory_space<vmem>>, vector<1x1x8xf32>
    %169 = vector.shape_cast %168 : vector<1x1x8xf32> to vector<1x8xf32>
    %170 = vector.broadcast %169 : vector<1x8xf32> to vector<16x8xf32>
    %171 = arith.addf %167, %170 : vector<16x8xf32>
    %172 = vector.shape_cast %171 : vector<16x8xf32> to vector<2x8x8xf32>
    %173 = arith.truncf %156 : vector<2x8x8xf32> to vector<2x8x8xbf16>
    %174 = arith.truncf %164 : vector<2x8x8xf32> to vector<2x8x8xbf16>
    "tpu.trace_start"() <{level = 10 : i32, message = "bqd,bkd->bqk"}> : () -> ()
    %cst_119 = arith.constant dense<0.000000e+00> : vector<2x8x8xf32>
    %175 = tpu.matmul %173, %174, %cst_119 {dimension_numbers = #tpu.dot_dimension_numbers<[2], [2], [1], [1], [0, 0, 0, 1, 1, 1], [0], [0]>} : vector<2x8x8xbf16>, vector<2x8x8xbf16>, vector<2x8x8xf32> -> vector<2x8x8xf32>
    "tpu.trace_stop"() : () -> ()
    %cst_120 = arith.constant dense<0xFF800000> : vector<2x8xf32>
    %176 = vector.multi_reduction <maximumf>, %175, %cst_120 [2] : vector<2x8x8xf32> to vector<2x8xf32>
    %177 = vector.shape_cast %176 : vector<2x8xf32> to vector<2x8x1xf32>
    %178 = vector.broadcast %177 : vector<2x8x1xf32> to vector<2x8x8xf32>
    %179 = arith.subf %175, %178 : vector<2x8x8xf32>
    %180 = math.exp %179 : vector<2x8x8xf32>
    %cst_121 = arith.constant dense<0.000000e+00> : vector<2x8xf32>
    %181 = vector.multi_reduction <add>, %180, %cst_121 [2] : vector<2x8x8xf32> to vector<2x8xf32>
    %182 = vector.shape_cast %181 : vector<2x8xf32> to vector<2x8x1xf32>
    %183 = vector.broadcast %182 : vector<2x8x1xf32> to vector<2x8x8xf32>
    %184 = arith.divf %180, %183 : vector<2x8x8xf32>
    %c3_122 = arith.constant 3 : index
    %c0_123 = arith.constant 0 : index
    %c0_124 = arith.constant 0 : index
    %c0_125 = arith.constant 0 : index
    %185 = vector.load %arg12[%c3_122, %c0_123, %c0_124, %c0_125] : memref<4x2x8x8xf32, #tpu.memory_space<vmem>>, vector<1x2x8x8xf32>
    %186 = vector.shape_cast %185 : vector<1x2x8x8xf32> to vector<2x8x8xf32>
    %187 = vector.shape_cast %184 : vector<2x8x8xf32> to vector<1x2x8x8xf32>
    tpu.vector_store %arg12[%c3_122, %c0_123, %c0_124, %c0_125], %187 {strides = array<i32>} : memref<4x2x8x8xf32, #tpu.memory_space<vmem>>, vector<1x2x8x8xf32>,
    %188 = arith.truncf %184 : vector<2x8x8xf32> to vector<2x8x8xbf16>
    %189 = arith.truncf %172 : vector<2x8x8xf32> to vector<2x8x8xbf16>
    "tpu.trace_start"() <{level = 10 : i32, message = "bqk,bkd->bqd"}> : () -> ()
    %cst_126 = arith.constant dense<0.000000e+00> : vector<2x8x8xf32>
    %190 = tpu.matmul %188, %189, %cst_126 {dimension_numbers = #tpu.dot_dimension_numbers<[2], [1], [1], [2], [0, 0, 0, 1, 1, 2], [0], [0]>} : vector<2x8x8xbf16>, vector<2x8x8xbf16>, vector<2x8x8xf32> -> vector<2x8x8xf32>
    "tpu.trace_stop"() : () -> ()
    %191 = vector.shape_cast %190 : vector<2x8x8xf32> to vector<16x8xf32>
    %192 = arith.truncf %191 : vector<16x8xf32> to vector<16x8xbf16>
    %c3_127 = arith.constant 3 : index
    %c0_128 = arith.constant 0 : index
    %c0_129 = arith.constant 0 : index
    %193 = vector.load %arg7[%c3_127, %c0_128, %c0_129] : memref<4x8x32xbf16, #tpu.memory_space<vmem>>, vector<1x8x32xbf16>
    %194 = vector.shape_cast %193 : vector<1x8x32xbf16> to vector<8x32xbf16>
    %cst_130 = arith.constant dense<0.000000e+00> : vector<16x32xf32>
    %195 = tpu.matmul %192, %194, %cst_130 {dimension_numbers = #tpu.dot_dimension_numbers<[1], [0], [0], [1], [0, 0, 1, 1], [], []>} : vector<16x8xbf16>, vector<8x32xbf16>, vector<16x32xf32> -> vector<16x32xf32>
    %196 = arith.addf %148, %195 : vector<16x32xf32>
    %c0_131 = arith.constant 0 : index
    %c0_132 = arith.constant 0 : index
    %197 = vector.load %arg9[%c0_131, %c0_132] : memref<1x32xf32, #tpu.memory_space<vmem>>, vector<1x32xf32>
    %c0_133 = arith.constant 0 : index
    %c0_134 = arith.constant 0 : index
    %198 = vector.load %arg10[%c0_133, %c0_134] : memref<1x32xf32, #tpu.memory_space<vmem>>, vector<1x32xf32>
    %cst_135 = arith.constant dense<0.000000e+00> : vector<16xf32>
    %199 = vector.multi_reduction <add>, %196, %cst_135 [1] : vector<16x32xf32> to vector<16xf32>
    %200 = vector.shape_cast %199 : vector<16xf32> to vector<16x1xf32>
    %cst_136 = arith.constant 3.200000e+01 : f32
    %201 = vector.broadcast %cst_136 : f32 to vector<16x1xf32>
    %202 = arith.divf %200, %201 : vector<16x1xf32>
    %203 = vector.broadcast %202 : vector<16x1xf32> to vector<16x32xf32>
    %204 = arith.subf %196, %203 : vector<16x32xf32>
    %205 = arith.mulf %204, %204 : vector<16x32xf32>
    %cst_137 = arith.constant dense<0.000000e+00> : vector<16xf32>
    %206 = vector.multi_reduction <add>, %205, %cst_137 [1] : vector<16x32xf32> to vector<16xf32>
    %207 = vector.shape_cast %206 : vector<16xf32> to vector<16x1xf32>
    %cst_138 = arith.constant 3.200000e+01 : f32
    %208 = vector.broadcast %cst_138 : f32 to vector<16x1xf32>
    %209 = arith.divf %207, %208 : vector<16x1xf32>
    %cst_139 = arith.constant 9.99999996E-13 : f32
    %210 = vector.broadcast %cst_139 : f32 to vector<16x1xf32>
    %211 = arith.addf %209, %210 : vector<16x1xf32>
    %212 = math.rsqrt %211 : vector<16x1xf32>
    %213 = vector.broadcast %212 : vector<16x1xf32> to vector<16x32xf32>
    %214 = arith.mulf %204, %213 : vector<16x32xf32>
    %215 = vector.broadcast %197 : vector<1x32xf32> to vector<16x32xf32>
    %216 = arith.mulf %214, %215 : vector<16x32xf32>
    %217 = vector.broadcast %198 : vector<1x32xf32> to vector<16x32xf32>
    %218 = arith.addf %216, %217 : vector<16x32xf32>
    %c0_140 = arith.constant 0 : index
    %c0_141 = arith.constant 0 : index
    %219 = vector.load %arg11[%c0_140, %c0_141] : memref<16x32xf32, #tpu.memory_space<vmem>>, vector<16x32xf32>
    tpu.vector_store %arg11[%c0_140, %c0_141], %218 {strides = array<i32>} : memref<16x32xf32, #tpu.memory_space<vmem>>, vector<16x32xf32>,
    return
  }
}

</mosaic_0001>

<bundles_post_ra>
// kernel: tpu_custom_call.1
= control target key start
LH: loop header
LB: loop body
LE: loop exit
PB: predicated region body
PF: predicated region fallthrough
CT: control target
= control target key end

     0   :  { %18 = vsyncpa [#allocation3], 0  ;;  %v2541_v1 = vmov 0.0   ;;  %vm2542_vm0 = vmmov 0   ;;  %vm78_vm1 = vcmask 261120   ;;  %s2987_s0 = inlined_call_operand.vmem [shape: f32[16,32], index: 0, kind: input, shape index: {}]   ;;  %s2988_s1 = inlined_call_operand.vmem [shape: bf16[4,32,8], index: 1, kind: input, shape index: {}]   ;;  %s2989_s2 = inlined_call_operand.vmem [shape: f32[4,1,8], index: 2, kind: input, shape index: {}]   ;;  %s2990_s3 = inlined_call_operand.vmem [shape: bf16[4,32,8], index: 3, kind: input, shape index: {}]   ;;  %s2991_s4 = inlined_call_operand.vmem [shape: f32[4,1,8], index: 4, kind: input, shape index: {}]   ;;  %s2992_s5 = inlined_call_operand.vmem [shape: bf16[4,32,8], index: 5, kind: input, shape index: {}]   ;;  %s2993_s6 = inlined_call_operand.vmem [shape: f32[4,1,8], index: 6, kind: input, shape index: {}]   ;;  %s2994_s7 = inlined_call_operand.vmem [shape: bf16[4,8,32], index: 7, kind: input, shape index: {}]   ;;  %s2995_s8 = inlined_call_operand.vmem [shape: f32[1,32], index: 8, kind: input, shape index: {}]   ;;  %s2996_s9 = inlined_call_operand.vmem [shape: f32[1,32], index: 9, kind: input, shape index: {}]   ;;  %s2997_s10 = inlined_call_operand.vmem [shape: f32[1,32], index: 10, kind: input, shape index: {}]   ;;  %s2998_s11 = inlined_call_operand.hbm [shape: f32[16,32], index: 11, kind: output, shape index: {0}]   ;;  %s2999_s12 = inlined_call_operand.hbm [shape: f32[4,2,8,8], index: 12, kind: output, shape index: {1}]  }
   0x1   :  { %v2431_v0 = vld [vmem:[%s2990_s3] sm:$0xff]   ;;  %2203 = vmatprep.subr.bf16.mxu1 %v2541_v1  ;;  %2195 = vmatprep.subr.bf16.mxu0 %v2541_v1  ;;  %v2432_v2 = vld [vmem:[%s2990_s3 + $0x8] sm:$0xff]  }
   0x2   :  { %2204 = vmatpush3.bf16.msra.mxu1 %v2431_v0  ;;  %v2433_v3 = vld [vmem:[%s2988_s1] sm:$0xff]   ;;  %2207 = vmatprep.mubr.msk.bf16.mxu1 %vm2542_vm0, %v2541_v1  ;;  %v44_v5 = vld [vmem:[%s2987_s0 + $0x8] sm:$0xff] }
   0x3   :  { %2205 = vmatprep.subr.bf16.mxu1 %v2541_v1  ;;  %v43_v4 = vld [vmem:[%s2987_s0] sm:$0xff]  ;;  %2199 = vmatprep.mubr.msk.bf16.mxu0 %vm2542_vm0, %v2541_v1  ;;  %v2434_v6 = vld [vmem:[%s2988_s1 + $0x8] sm:$0xff]  }
   0x4   :  { %2196 = vmatpush3.bf16.msra.mxu0 %v2433_v3  ;;  %v2637_v7 = vpack.c.bf16 %v44_v5, %v43_v4  ;;  %v2435_v8 = vld [vmem:[%s2992_s5] sm:$0xff]   ;;  %v2436_v9 = vld [vmem:[%s2992_s5 + $0x8] sm:$0xff]  }
   0x5   :  { %2197 = vmatprep.subr.bf16.mxu0 %v2541_v1 }
   0x6   :  { %2206 = vmatpush3.bf16.msra.mxu1 %v2432_v2 }
   0x7   :  { %2219 = vmatprep.subr.bf16.mxu1 %v2541_v1 }
   0x8   :  { %2198 = vmatpush3.bf16.msra.mxu0 %v2434_v6 }
   0x9   :  { %2208 = vmatmul.mubr.msk.bf16.vlgmr.msra.gmra.mrb[0].mxu1 %vm78_vm1, %v2637_v7  ;;  %2211 = vmatprep.subr.bf16.mxu0 %v2541_v1 }
   0xa   :  { %2221 = vmatprep.mubr.msk.bf16.mxu1 %vm2542_vm0, %v2541_v1 }
   0xb   :  { %2200 = vmatmul.mubr.msk.bf16.vlgmr.msra.gmra.mrb[0].mxu0 %vm78_vm1, %v2637_v7 }
   0xc   :  { %2212 = vmatpush3.bf16.msra.mxu0 %v2435_v8  ;;  %2215 = vmatprep.mubr.msk.bf16.mxu0 %vm2542_vm0, %v2541_v1 }
   0xd   :  { %2213 = vmatprep.subr.bf16.mxu0 %v2541_v1 }
  0x10   :  { %2214 = vmatpush3.bf16.msra.mxu0 %v2436_v9 }
  0x11   :  { %2225 = vmatprep.subr.bf16.mxu0 %v2541_v1 }
  0x13   :  { %2216 = vmatmul.mubr.msk.bf16.vlgmr.msra.gmra.mrb[4].mxu0 %vm78_vm1, %v2637_v7 }
  0x14   :  { %19 = vsyncpa [#allocation5], 0  ;;  %2227 = vmatprep.mubr.msk.bf16.mxu0 %vm2542_vm0, %v2541_v1  ;;  %v2005_v10 = vld [vmem:[%s2991_s4] ss:$0 sm:$0xff]  ;;  %vm255_vm2 = vcmask 64512   ;;  %vm379_vm3 = vcmask 1043456  }
  0x15   :  { %v2001_v15 = vld [vmem:[%s2989_s2] ss:$0 sm:$0xff]  ;;  %v2439_v9 = vld [vmem:[%s2988_s1 + $0x10] sm:$0xff]  }
  0x16   :  { %v2009_v27 = vld [vmem:[%s2993_s6] ss:$0 sm:$0xff] }
  0x17   :  { %v470_v6 = vld [vmem:[%s2994_s7] sm:$0xf] }
  0x18   :  { %v475_v8 = vsel %vm379_vm3, %v470_v6, 0 }
  0xdc   :  { %v180_v11 = vpop.f32.mrb[0].mxu1 }
  0xdd   :  { %v181_v12 = vadd.f32 %v2005_v10, %v180_v11  ;;  %v2209_v13 = vpop.f32.mrb[1].mxu1  ;;  %v2441_v11 = vld [vmem:[%s2992_s5 + $0x10] sm:$0xff]  }
  0xde   :  { %v183_v14 = vpop.f32.mrb[2].mxu1  ;;  %v116_v16 = vpop.f32.mrb[0].mxu0 }
  0xdf   :  { %v253_v17 = vpack.c.bf16 %v181_v12, %v181_v12  ;;  %v184_v18 = vadd.f32 %v2005_v10, %v183_v14  ;;  %v2210_v19 = vpop.f32.mrb[3].mxu1  ;;  %v2201_v20 = vpop.f32.mrb[1].mxu0  ;;  %v117_v24 = vadd.f32 %v2001_v15, %v116_v16  ;;  %v2440_v10 = vld [vmem:[%s2988_s1 + $0x18] sm:$0xff]  }
  0xe0   :  { %v119_v21 = vpop.f32.mrb[2].mxu0  ;;  %v2442_v12 = vld [vmem:[%s2992_s5 + $0x18] sm:$0xff]  }
  0xe1   :  { %v260_v22 = vsel %vm255_vm2, %v253_v17, 0  ;;  %v254_v23 = vpack.c.bf16 %v184_v18, %v184_v18  ;;  %v2202_v25 = vpop.f32.mrb[3].mxu0  ;;  %v251_v28 = vpack.c.bf16 %v117_v24, %v117_v24  ;;  %v120_v29 = vadd.f32 %v2001_v15, %v119_v21  ;;  %v2437_v18 = vld [vmem:[%s2990_s3 + $0x10] sm:$0xff]  }
  0xe2   :  { %2220 = vmatpush3.bf16.xpose.msra.mxu1 %v260_v22 }
  0xe3   :  { %v306_v26 = vsel %vm255_vm2, %v254_v23, 0  ;;  %2231 = vmatprep.subr.bf16.mxu1 %v2541_v1  ;;  %v252_v34 = vpack.c.bf16 %v120_v29, %v120_v29  ;;  %v2438_v23 = vld [vmem:[%s2990_s3 + $0x18] sm:$0xff]  }
  0xe4   :  { %2226 = vmatpush3.bf16.xpose.msra.mxu0 %v306_v26 }
  0xe5   :  { %2237 = vmatprep.subr.bf16.mxu0 %v2541_v1 }
  0xe6   :  { %v244_v30 = vpop.f32.mrb[4].mxu0 }
  0xe7   :  { %v245_v31 = vadd.f32 %v2009_v27, %v244_v30  ;;  %v2217_v32 = vpop.f32.mrb[5].mxu0 }
  0xe8   :  { %v247_v33 = vpop.f32.mrb[6].mxu0  ;;  %v2032_v32 = vld [vmem:[%s2991_s4 + $0x1] ss:$0 sm:$0xff] }
  0xe9   :  { %2222 = vmatmul.mubr.msk.bf16.vlgmr.msra.gmra.mrb[4].mxu1 %vm255_vm2, %v251_v28  ;;  %v374_v35 = vpack.c.bf16 %v245_v31, %v245_v31  ;;  %v248_v36 = vadd.f32 %v2009_v27, %v247_v33  ;;  %v2218_v37 = vpop.f32.mrb[7].mxu0 }
  0xea   :  { %2233 = vmatprep.mubr.msk.bf16.mxu1 %vm2542_vm0, %v2541_v1 }
  0xeb   :  { %2228 = vmatmul.mubr.msk.bf16.vlgmr.msra.gmra.mrb[8].mxu0 %vm255_vm2, %v252_v34  ;;  %v381_v38 = vsel %vm379_vm3, %v374_v35, 0  ;;  %v375_v39 = vpack.c.bf16 %v248_v36, %v248_v36  ;;  %v2041_v34 = vld [vmem:[%s2993_s6 + $0x1] ss:$0 sm:$0xff] }
  0xec   :  { %2232 = vmatpush3.bf16.msra.mxu1 %v381_v38  ;;  %2239 = vmatprep.mubr.msk.bf16.mxu0 %vm2542_vm0, %v2541_v1  ;;  %v2023_v38 = vld [vmem:[%s2989_s2 + $0x1] ss:$0 sm:$0xff] }
  0xed   :  { %v427_v40 = vsel %vm379_vm3, %v375_v39, 0  ;;  %2243 = vmatprep.subr.bf16.mxu1 %v2541_v1 }
  0xee   :  { %2238 = vmatpush3.bf16.msra.mxu0 %v427_v40 }
  0xef   :  { %2249 = vmatprep.subr.bf16.mxu0 %v2541_v1 }
 0x1bc   :  { %v296_v41 = vpop.f32.mrb[4].mxu1 }
 0x1bd   :  { %v2223_v42 = vpop.f32.mrb[5].mxu1  ;;  %v348_v43 = vsel %vm255_vm2, %v296_v41, -inf }
 0x1be   :  { %349 = vmax.xlane.f32.xlu0 %v348_v43  ;;  %v299_v44 = vpop.f32.mrb[6].mxu1  ;;  %v342_v45 = vpop.f32.mrb[8].mxu0 }
 0x1bf   :  { %v2224_v46 = vpop.f32.mrb[7].mxu1  ;;  %v2229_v47 = vpop.f32.mrb[9].mxu0  ;;  %v351_v50 = vsel %vm255_vm2, %v342_v45, -inf }
 0x1c0   :  { %v345_v48 = vpop.f32.mrb[10].mxu0 }
 0x1c1   :  { %v2230_v49 = vpop.f32.mrb[11].mxu0 }
 0x1c2   :  { %352 = vmax.xlane.f32.xlu0 %v351_v50 }
 0x24b   :  { %v350_v51 = vpop.xlane.xlu0 %349 }
 0x24c   :  { %v354_v52 = vsub.f32 %v296_v41, %v350_v51 }
 0x24e   :  { %v356_v53 = vmul.f32 1.442695, %v354_v52 }
 0x24f   :  { %v353_v54 = vpop.xlane.xlu0 %352 }
 0x250   :  { %2455 = vpow2.f32 %v356_v53  ;;  %v355_v55 = vsub.f32 %v342_v45, %v353_v54 }
 0x252   :  { %v358_v56 = vmul.f32 1.442695, %v355_v55 }
 0x254   :  { %2457 = vpow2.f32 %v358_v56 }
 0x25a   :  { %v2456_v57 = vpop.eup %2455 }
 0x25b   :  { %v360_v58 = vsel %vm255_vm2, %v2456_v57, 0.0 }
 0x25c   :  { %361 = vadd.xlane.f32.xlu1 %v360_v58 }
 0x25e   :  { %v2458_v59 = vpop.eup %2457 }
 0x25f   :  { %v363_v60 = vsel %vm255_vm2, %v2458_v59, 0.0 }
 0x260   :  { %364 = vadd.xlane.f32.xlu1 %v363_v60 }
 0x2e9   :  { %v362_v61 = vpop.xlane.xlu1 %361 }
 0x2ea   :  { %2459 = vrcp.f32 %v362_v61 }
 0x2ed   :  { %v365_v62 = vpop.xlane.xlu1 %364 }
 0x2ee   :  { %2461 = vrcp.f32 %v365_v62 }
 0x2f4   :  { %v2460_v63 = vpop.eup %2459 }
 0x2f5   :  { %v367_v0 = vmul.f32 %v2460_v63, %v2456_v57 }
 0x2f7   :  { %370 = vst.msk [vmem:[#allocation4] sm:$0xff] %vm255_vm2, %v367_v0  ;;  %v372_v2 = vpack.c.bf16 %v367_v0, %v367_v0 }
 0x2f8   :  { %v2462_v3 = vpop.eup %2461 }
 0x2f9   :  { %v369_v4 = vmul.f32 %v2462_v3, %v2458_v59  ;;  %2234 = vmatmul.mubr.msk.bf16.vlgmr.msra.gmra.mrb[8].mxu1 %vm255_vm2, %v372_v2 }
 0x2fa   :  { %2245 = vmatprep.mubr.msk.bf16.mxu1 %vm2542_vm0, %v2541_v1  ;;  %2244 = vmatpush3.bf16.msra.mxu1 %v475_v8 }
 0x2fb   :  { %371 = vst.msk [vmem:[#allocation4 + $0x8] sm:$0xff] %vm255_vm2, %v369_v4  ;;  %v373_v5 = vpack.c.bf16 %v369_v4, %v369_v4  ;;  %2257 = vmatprep.subr.bf16.mxu1 %v2541_v1 }
 0x2fd   :  { %2240 = vmatmul.mubr.msk.bf16.vlgmr.msra.gmra.mrb[12].mxu0 %vm255_vm2, %v373_v5 }
 0x2fe   :  { %2253 = vmatprep.mubr.msk.bf16.mxu0 %vm2542_vm0, %v2541_v1  ;;  %2250 = vmatpush3.bf16.msra.mxu0 %v2439_v9 }
 0x2ff   :  { %2251 = vmatprep.subr.bf16.mxu0 %v2541_v1 }
 0x302   :  { %2252 = vmatpush3.bf16.msra.mxu0 %v2440_v10 }
 0x303   :  { %2265 = vmatprep.subr.bf16.mxu0 %v2541_v1 }
 0x305   :  { %2254 = vmatmul.mubr.msk.bf16.vlgmr.msra.gmra.mrb[16].mxu0 %vm78_vm1, %v2637_v7 }
 0x306   :  { %2266 = vmatpush3.bf16.msra.mxu0 %v2441_v11  ;;  %2269 = vmatprep.mubr.msk.bf16.mxu0 %vm2542_vm0, %v2541_v1 }
 0x307   :  { %2267 = vmatprep.subr.bf16.mxu0 %v2541_v1 }
 0x30a   :  { %2268 = vmatpush3.bf16.msra.mxu0 %v2442_v12 }
 0x30b   :  { %2279 = vmatprep.subr.bf16.mxu0 %v2541_v1 }
 0x30d   :  { %2270 = vmatmul.mubr.msk.bf16.vlgmr.msra.gmra.mrb[20].mxu0 %vm78_vm1, %v2637_v7 }
 0x30e   :  { %2281 = vmatprep.mubr.msk.bf16.mxu0 %vm2542_vm0, %v2541_v1 }
 0x3cc   :  { %v417_v13 = vpop.f32.mrb[8].mxu1 }
 0x3cd   :  { %v2235_v14 = vpop.f32.mrb[9].mxu1 }
 0x3ce   :  { %v420_v15 = vpop.f32.mrb[10].mxu1 }
 0x3cf   :  { %v2236_v16 = vpop.f32.mrb[11].mxu1 }
 0x3d0   :  { %v463_v17 = vpop.f32.mrb[12].mxu0  ;;  %v2049_v16 = vld [vmem:[%s2994_s7 + $0x4] sm:$0xf] }
 0x3d1   :  { %v469_v19 = vpack.c.bf16 %v463_v17, %v417_v13  ;;  %v2241_v20 = vpop.f32.mrb[13].mxu0 }
 0x3d2   :  { %v466_v21 = vpop.f32.mrb[14].mxu0 }
 0x3d3   :  { %v2242_v22 = vpop.f32.mrb[15].mxu0  ;;  %2246 = vmatmul.mubr.msk.bf16.vlgmr.msra.gmra.mrb[12].mxu1 %vm255_vm2, %v469_v19  ;;  %v942_v21 = vsel %vm379_vm3, %v2049_v16, 0 }
 0x3d4   :  { %2258 = vmatpush3.bf16.msra.mxu1 %v2437_v18  ;;  %2261 = vmatprep.mubr.msk.bf16.mxu1 %vm2542_vm0, %v2541_v1 }
 0x3d5   :  { %2259 = vmatprep.subr.bf16.mxu1 %v2541_v1 }
 0x3d8   :  { %2260 = vmatpush3.bf16.msra.mxu1 %v2438_v23  ;;  %v579_v24 = vpop.f32.mrb[16].mxu0  ;;  %v2445_v23 = vld [vmem:[%s2988_s1 + $0x20] sm:$0xff]  }
 0x3d9   :  { %2273 = vmatprep.subr.bf16.mxu1 %v2541_v1  ;;  %v2255_v25 = vpop.f32.mrb[17].mxu0  ;;  %v580_v45 = vadd.f32 %v2023_v38, %v579_v24  ;;  %v2446_v24 = vld [vmem:[%s2988_s1 + $0x28] sm:$0xff]  }
 0x3da   :  { %v582_v26 = vpop.f32.mrb[18].mxu0  ;;  %v2447_v25 = vld [vmem:[%s2992_s5 + $0x20] sm:$0xff]  }
 0x3db   :  { %2262 = vmatmul.mubr.msk.bf16.vlgmr.msra.gmra.mrb[16].mxu1 %vm78_vm1, %v2637_v7  ;;  %v2256_v27 = vpop.f32.mrb[19].mxu0  ;;  %v718_v49 = vpack.c.bf16 %v580_v45, %v580_v45  ;;  %v583_v50 = vadd.f32 %v2023_v38, %v582_v26  ;;  %v2448_v26 = vld [vmem:[%s2992_s5 + $0x28] sm:$0xff]  }
 0x3dc   :  { %2275 = vmatprep.mubr.msk.bf16.mxu1 %vm2542_vm0, %v2541_v1 }
 0x3dd   :  { %v719_v53 = vpack.c.bf16 %v583_v50, %v583_v50 }
 0x3e0   :  { %v711_v28 = vpop.f32.mrb[20].mxu0 }
 0x3e1   :  { %v2271_v29 = vpop.f32.mrb[21].mxu0  ;;  %v712_v42 = vadd.f32 %v2041_v34, %v711_v28 }
 0x3e2   :  { %v714_v30 = vpop.f32.mrb[22].mxu0 }
 0x3e3   :  { %v2272_v31 = vpop.f32.mrb[23].mxu0  ;;  %v715_v46 = vadd.f32 %v2041_v34, %v714_v30  ;;  %v841_v48 = vpack.c.bf16 %v712_v42, %v712_v42 }
 0x3e4   :  { %v2443_v31 = vld [vmem:[%s2990_s3 + $0x20] sm:$0xff]  }
 0x3e5   :  { %v842_v51 = vpack.c.bf16 %v715_v46, %v715_v46  ;;  %v847_v52 = vsel %vm379_vm3, %v841_v48, 0  ;;  %v2065_v46 = vld [vmem:[%s2991_s4 + $0x2] ss:$0 sm:$0xff] }
 0x3e6   :  { %v2074_v48 = vld [vmem:[%s2993_s6 + $0x2] ss:$0 sm:$0xff] }
 0x3e7   :  { %v893_v54 = vsel %vm379_vm3, %v842_v51, 0 }
 0x4ae   :  { %v645_v33 = vpop.f32.mrb[16].mxu1 }
 0x4af   :  { %v646_v35 = vadd.f32 %v2032_v32, %v645_v33  ;;  %v2263_v36 = vpop.f32.mrb[17].mxu1 }
 0x4b0   :  { %v648_v37 = vpop.f32.mrb[18].mxu1 }
 0x4b1   :  { %v720_v39 = vpack.c.bf16 %v646_v35, %v646_v35  ;;  %v649_v40 = vadd.f32 %v2032_v32, %v648_v37  ;;  %v2264_v41 = vpop.f32.mrb[19].mxu1  ;;  %v2444_v37 = vld [vmem:[%s2990_s3 + $0x28] sm:$0xff]  }
 0x4b3   :  { %v726_v43 = vsel %vm255_vm2, %v720_v39, 0  ;;  %v721_v44 = vpack.c.bf16 %v649_v40, %v649_v40 }
 0x4b4   :  { %2274 = vmatpush3.bf16.xpose.msra.mxu1 %v726_v43 }
 0x4b5   :  { %v772_v47 = vsel %vm255_vm2, %v721_v44, 0  ;;  %2285 = vmatprep.subr.bf16.mxu1 %v2541_v1 }
 0x4b6   :  { %2280 = vmatpush3.bf16.xpose.msra.mxu0 %v772_v47 }
 0x4b7   :  { %2291 = vmatprep.subr.bf16.mxu0 %v2541_v1 }
 0x4bb   :  { %2276 = vmatmul.mubr.msk.bf16.vlgmr.msra.gmra.mrb[20].mxu1 %vm255_vm2, %v718_v49 }
 0x4bc   :  { %2286 = vmatpush3.bf16.msra.mxu1 %v847_v52  ;;  %2287 = vmatprep.mubr.msk.bf16.mxu1 %vm2542_vm0, %v2541_v1  ;;  %v2056_v52 = vld [vmem:[%s2989_s2 + $0x2] ss:$0 sm:$0xff] }
 0x4bd   :  { %2282 = vmatmul.mubr.msk.bf16.vlgmr.msra.gmra.mrb[24].mxu0 %vm255_vm2, %v719_v53  ;;  %2297 = vmatprep.subr.bf16.mxu1 %v2541_v1 }
 0x4be   :  { %2292 = vmatpush3.bf16.msra.mxu0 %v893_v54  ;;  %2293 = vmatprep.mubr.msk.bf16.mxu0 %vm2542_vm0, %v2541_v1 }
 0x4bf   :  { %2303 = vmatprep.subr.bf16.mxu0 %v2541_v1 }
 0x58e   :  { %v762_v55 = vpop.f32.mrb[20].mxu1 }
 0x58f   :  { %v2277_v56 = vpop.f32.mrb[21].mxu1  ;;  %v814_v57 = vsel %vm255_vm2, %v762_v55, -inf }
 0x590   :  { %815 = vmax.xlane.f32.xlu0 %v814_v57  ;;  %v765_v58 = vpop.f32.mrb[22].mxu1  ;;  %v808_v59 = vpop.f32.mrb[24].mxu0 }
 0x591   :  { %v2278_v60 = vpop.f32.mrb[23].mxu1  ;;  %v2283_v61 = vpop.f32.mrb[25].mxu0  ;;  %v817_v62 = vsel %vm255_vm2, %v808_v59, -inf }
 0x592   :  { %818 = vmax.xlane.f32.xlu1 %v817_v62  ;;  %v811_v63 = vpop.f32.mrb[26].mxu0 }
 0x593   :  { %v2284_v0 = vpop.f32.mrb[27].mxu0 }
 0x61d   :  { %v816_v2 = vpop.xlane.xlu0 %815 }
 0x61e   :  { %v820_v3 = vsub.f32 %v762_v55, %v816_v2 }
 0x61f   :  { %v819_v4 = vpop.xlane.xlu1 %818 }
 0x620   :  { %v822_v5 = vmul.f32 1.442695, %v820_v3  ;;  %v821_v6 = vsub.f32 %v808_v59, %v819_v4 }
 0x622   :  { %2463 = vpow2.f32 %v822_v5  ;;  %v824_v8 = vmul.f32 1.442695, %v821_v6 }
 0x624   :  { %2465 = vpow2.f32 %v824_v8 }
 0x62c   :  { %v2464_v9 = vpop.eup %2463 }
 0x62d   :  { %v826_v10 = vsel %vm255_vm2, %v2464_v9, 0.0 }
 0x62e   :  { %v2466_v11 = vpop.eup %2465  ;;  %827 = vadd.xlane.f32.xlu0 %v826_v10 }
 0x62f   :  { %v829_v12 = vsel %vm255_vm2, %v2466_v11, 0.0 }
 0x630   :  { %830 = vadd.xlane.f32.xlu1 %v829_v12 }
 0x6bb   :  { %v828_v13 = vpop.xlane.xlu0 %827 }
 0x6bc   :  { %2467 = vrcp.f32 %v828_v13 }
 0x6bd   :  { %v831_v14 = vpop.xlane.xlu1 %830 }
 0x6be   :  { %2469 = vrcp.f32 %v831_v14 }
 0x6c6   :  { %v2468_v15 = vpop.eup %2467 }
 0x6c7   :  { %v833_v17 = vmul.f32 %v2468_v15, %v2464_v9 }
 0x6c8   :  { %v2470_v18 = vpop.eup %2469 }
 0x6c9   :  { %837 = vst.msk [vmem:[#allocation4 + $0x10] sm:$0xff] %vm255_vm2, %v833_v17  ;;  %v835_v19 = vmul.f32 %v2470_v18, %v2466_v11  ;;  %v839_v20 = vpack.c.bf16 %v833_v17, %v833_v17 }
 0x6cb   :  { %838 = vst.msk [vmem:[#allocation4 + $0x18] sm:$0xff] %vm255_vm2, %v835_v19  ;;  %2288 = vmatmul.mubr.msk.bf16.vlgmr.msra.gmra.mrb[24].mxu1 %vm255_vm2, %v839_v20  ;;  %v840_v22 = vpack.c.bf16 %v835_v19, %v835_v19 }
 0x6cc   :  { %2298 = vmatpush3.bf16.msra.mxu1 %v942_v21  ;;  %2299 = vmatprep.mubr.msk.bf16.mxu1 %vm2542_vm0, %v2541_v1 }
 0x6cd   :  { %2294 = vmatmul.mubr.msk.bf16.vlgmr.msra.gmra.mrb[28].mxu0 %vm255_vm2, %v840_v22  ;;  %2311 = vmatprep.subr.bf16.mxu1 %v2541_v1 }
 0x6ce   :  { %2307 = vmatprep.mubr.msk.bf16.mxu0 %vm2542_vm0, %v2541_v1  ;;  %2304 = vmatpush3.bf16.msra.mxu0 %v2445_v23 }
 0x6cf   :  { %2305 = vmatprep.subr.bf16.mxu0 %v2541_v1 }
 0x6d2   :  { %2306 = vmatpush3.bf16.msra.mxu0 %v2446_v24 }
 0x6d3   :  { %2319 = vmatprep.subr.bf16.mxu0 %v2541_v1 }
 0x6d5   :  { %2308 = vmatmul.mubr.msk.bf16.vlgmr.msra.gmra.mrb[32].mxu0 %vm78_vm1, %v2637_v7 }
 0x6d6   :  { %2320 = vmatpush3.bf16.msra.mxu0 %v2447_v25  ;;  %2323 = vmatprep.mubr.msk.bf16.mxu0 %vm2542_vm0, %v2541_v1 }
 0x6d7   :  { %2321 = vmatprep.subr.bf16.mxu0 %v2541_v1 }
 0x6da   :  { %2322 = vmatpush3.bf16.msra.mxu0 %v2448_v26 }
 0x6db   :  { %2333 = vmatprep.subr.bf16.mxu0 %v2541_v1 }
 0x6dd   :  { %2324 = vmatmul.mubr.msk.bf16.vlgmr.msra.gmra.mrb[36].mxu0 %vm78_vm1, %v2637_v7 }
 0x6de   :  { %2335 = vmatprep.mubr.msk.bf16.mxu0 %vm2542_vm0, %v2541_v1 }
 0x79e   :  { %v883_v27 = vpop.f32.mrb[24].mxu1 }
 0x79f   :  { %v2289_v28 = vpop.f32.mrb[25].mxu1 }
 0x7a0   :  { %v886_v29 = vpop.f32.mrb[26].mxu1  ;;  %v929_v30 = vpop.f32.mrb[28].mxu0 }
 0x7a1   :  { %v935_v32 = vpack.c.bf16 %v929_v30, %v883_v27  ;;  %v2290_v33 = vpop.f32.mrb[27].mxu1  ;;  %v2295_v34 = vpop.f32.mrb[29].mxu0  ;;  %v2082_v30 = vld [vmem:[%s2994_s7 + $0x8] sm:$0xf] }
 0x7a2   :  { %v932_v35 = vpop.f32.mrb[30].mxu0 }
 0x7a3   :  { %v2296_v36 = vpop.f32.mrb[31].mxu0  ;;  %2300 = vmatmul.mubr.msk.bf16.vlgmr.msra.gmra.mrb[12].mxu1 %vm255_vm2, %v935_v32  ;;  %v1409_v35 = vsel %vm379_vm3, %v2082_v30, 0 }
 0x7a4   :  { %2312 = vmatpush3.bf16.msra.mxu1 %v2443_v31  ;;  %2315 = vmatprep.mubr.msk.bf16.mxu1 %vm2542_vm0, %v2541_v1 }
 0x7a5   :  { %2313 = vmatprep.subr.bf16.mxu1 %v2541_v1 }
 0x7a8   :  { %2314 = vmatpush3.bf16.msra.mxu1 %v2444_v37  ;;  %v1046_v38 = vpop.f32.mrb[32].mxu0  ;;  %v2451_v37 = vld [vmem:[%s2988_s1 + $0x30] sm:$0xff]  }
 0x7a9   :  { %2327 = vmatprep.subr.bf16.mxu1 %v2541_v1  ;;  %v2309_v39 = vpop.f32.mrb[33].mxu0  ;;  %v1047_v59 = vadd.f32 %v2056_v52, %v1046_v38  ;;  %v2452_v38 = vld [vmem:[%s2988_s1 + $0x38] sm:$0xff]  }
 0x7aa   :  { %v1049_v40 = vpop.f32.mrb[34].mxu0  ;;  %v2453_v39 = vld [vmem:[%s2992_s5 + $0x30] sm:$0xff]  }
 0x7ab   :  { %2316 = vmatmul.mubr.msk.bf16.vlgmr.msra.gmra.mrb[28].mxu1 %vm78_vm1, %v2637_v7  ;;  %v2310_v41 = vpop.f32.mrb[35].mxu0  ;;  %v1185_v63 = vpack.c.bf16 %v1047_v59, %v1047_v59  ;;  %v1050_v0 = vadd.f32 %v2056_v52, %v1049_v40  ;;  %v2454_v40 = vld [vmem:[%s2992_s5 + $0x38] sm:$0xff]  }
 0x7ac   :  { %2329 = vmatprep.mubr.msk.bf16.mxu1 %vm2542_vm0, %v2541_v1 }
 0x7ad   :  { %v1186_v4 = vpack.c.bf16 %v1050_v0, %v1050_v0 }
 0x7b0   :  { %v1178_v42 = vpop.f32.mrb[36].mxu0 }
 0x7b1   :  { %v2325_v43 = vpop.f32.mrb[37].mxu0  ;;  %v1179_v56 = vadd.f32 %v2074_v48, %v1178_v42 }
 0x7b2   :  { %v1181_v44 = vpop.f32.mrb[38].mxu0 }
 0x7b3   :  { %v2326_v45 = vpop.f32.mrb[39].mxu0  ;;  %v1182_v60 = vadd.f32 %v2074_v48, %v1181_v44  ;;  %v1308_v62 = vpack.c.bf16 %v1179_v56, %v1179_v56 }
 0x7b4   :  { %v2449_v45 = vld [vmem:[%s2990_s3 + $0x30] sm:$0xff]  }
 0x7b5   :  { %v1309_v2 = vpack.c.bf16 %v1182_v60, %v1182_v60  ;;  %v1314_v3 = vsel %vm379_vm3, %v1308_v62, 0  ;;  %v2098_v60 = vld [vmem:[%s2991_s4 + $0x3] ss:$0 sm:$0xff] }
 0x7b7   :  { %v1360_v5 = vsel %vm379_vm3, %v1309_v2, 0  ;;  %v2089_v2 = vld [vmem:[%s2989_s2 + $0x3] ss:$0 sm:$0xff] }
 0x87e   :  { %v1112_v47 = vpop.f32.mrb[28].mxu1 }
 0x87f   :  { %v1113_v49 = vadd.f32 %v2065_v46, %v1112_v47  ;;  %v2317_v50 = vpop.f32.mrb[29].mxu1 }
 0x880   :  { %v1115_v51 = vpop.f32.mrb[30].mxu1 }
 0x881   :  { %v1187_v53 = vpack.c.bf16 %v1113_v49, %v1113_v49  ;;  %v1116_v54 = vadd.f32 %v2065_v46, %v1115_v51  ;;  %v2318_v55 = vpop.f32.mrb[31].mxu1  ;;  %v2450_v51 = vld [vmem:[%s2990_s3 + $0x38] sm:$0xff]  }
 0x883   :  { %v1193_v57 = vsel %vm255_vm2, %v1187_v53, 0  ;;  %v1188_v58 = vpack.c.bf16 %v1116_v54, %v1116_v54 }
 0x884   :  { %2328 = vmatpush3.bf16.xpose.msra.mxu1 %v1193_v57 }
 0x885   :  { %v1239_v61 = vsel %vm255_vm2, %v1188_v58, 0  ;;  %2339 = vmatprep.subr.bf16.mxu1 %v2541_v1 }
 0x886   :  { %2334 = vmatpush3.bf16.xpose.msra.mxu0 %v1239_v61 }
 0x887   :  { %2345 = vmatprep.subr.bf16.mxu0 %v2541_v1 }
 0x88b   :  { %2330 = vmatmul.mubr.msk.bf16.vlgmr.msra.gmra.mrb[32].mxu1 %vm255_vm2, %v1185_v63 }
 0x88c   :  { %2340 = vmatpush3.bf16.msra.mxu1 %v1314_v3  ;;  %2341 = vmatprep.mubr.msk.bf16.mxu1 %vm2542_vm0, %v2541_v1 }
 0x88d   :  { %2336 = vmatmul.mubr.msk.bf16.vlgmr.msra.gmra.mrb[40].mxu0 %vm255_vm2, %v1186_v4  ;;  %2351 = vmatprep.subr.bf16.mxu1 %v2541_v1 }
 0x88e   :  { %2346 = vmatpush3.bf16.msra.mxu0 %v1360_v5  ;;  %2347 = vmatprep.mubr.msk.bf16.mxu0 %vm2542_vm0, %v2541_v1 }
 0x88f   :  { %2357 = vmatprep.subr.bf16.mxu0 %v2541_v1 }
 0x95e   :  { %v1229_v6 = vpop.f32.mrb[32].mxu1 }
 0x95f   :  { %v2331_v8 = vpop.f32.mrb[33].mxu1  ;;  %v1281_v9 = vsel %vm255_vm2, %v1229_v6, -inf }
 0x960   :  { %1282 = vmax.xlane.f32.xlu0 %v1281_v9  ;;  %v1232_v10 = vpop.f32.mrb[34].mxu1  ;;  %v1275_v11 = vpop.f32.mrb[40].mxu0 }
 0x961   :  { %v2332_v12 = vpop.f32.mrb[35].mxu1  ;;  %v2337_v13 = vpop.f32.mrb[41].mxu0  ;;  %v1284_v14 = vsel %vm255_vm2, %v1275_v11, -inf }
 0x962   :  { %1285 = vmax.xlane.f32.xlu1 %v1284_v14  ;;  %v1278_v15 = vpop.f32.mrb[42].mxu0 }
 0x963   :  { %v2338_v16 = vpop.f32.mrb[43].mxu0 }
 0x9ed   :  { %v1283_v17 = vpop.xlane.xlu0 %1282 }
 0x9ee   :  { %v1287_v18 = vsub.f32 %v1229_v6, %v1283_v17 }
 0x9ef   :  { %v1286_v19 = vpop.xlane.xlu1 %1285 }
 0x9f0   :  { %v1289_v20 = vmul.f32 1.442695, %v1287_v18  ;;  %v1288_v21 = vsub.f32 %v1275_v11, %v1286_v19 }
 0x9f2   :  { %2471 = vpow2.f32 %v1289_v20  ;;  %v1291_v22 = vmul.f32 1.442695, %v1288_v21 }
 0x9f4   :  { %2473 = vpow2.f32 %v1291_v22 }
 0x9fc   :  { %v2472_v23 = vpop.eup %2471 }
 0x9fd   :  { %v1293_v24 = vsel %vm255_vm2, %v2472_v23, 0.0 }
 0x9fe   :  { %v2474_v25 = vpop.eup %2473  ;;  %1294 = vadd.xlane.f32.xlu0 %v1293_v24 }
 0x9ff   :  { %v1296_v26 = vsel %vm255_vm2, %v2474_v25, 0.0 }
 0xa00   :  { %1297 = vadd.xlane.f32.xlu1 %v1296_v26 }
 0xa8b   :  { %v1295_v27 = vpop.xlane.xlu0 %1294 }
 0xa8c   :  { %2475 = vrcp.f32 %v1295_v27 }
 0xa8d   :  { %v1298_v28 = vpop.xlane.xlu1 %1297 }
 0xa8e   :  { %2477 = vrcp.f32 %v1298_v28 }
 0xa96   :  { %v2476_v29 = vpop.eup %2475 }
 0xa97   :  { %v1300_v31 = vmul.f32 %v2476_v29, %v2472_v23 }
 0xa98   :  { %v2478_v32 = vpop.eup %2477 }
 0xa99   :  { %1304 = vst.msk [vmem:[#allocation4 + $0x20] sm:$0xff] %vm255_vm2, %v1300_v31  ;;  %v1302_v33 = vmul.f32 %v2478_v32, %v2474_v25  ;;  %v1306_v34 = vpack.c.bf16 %v1300_v31, %v1300_v31 }
 0xa9b   :  { %1305 = vst.msk [vmem:[#allocation4 + $0x28] sm:$0xff] %vm255_vm2, %v1302_v33  ;;  %2342 = vmatmul.mubr.msk.bf16.vlgmr.msra.gmra.mrb[36].mxu1 %vm255_vm2, %v1306_v34  ;;  %v1307_v36 = vpack.c.bf16 %v1302_v33, %v1302_v33 }
 0xa9c   :  { %2352 = vmatpush3.bf16.msra.mxu1 %v1409_v35  ;;  %2353 = vmatprep.mubr.msk.bf16.mxu1 %vm2542_vm0, %v2541_v1 }
 0xa9d   :  { %2348 = vmatmul.mubr.msk.bf16.vlgmr.msra.gmra.mrb[44].mxu0 %vm255_vm2, %v1307_v36  ;;  %2365 = vmatprep.subr.bf16.mxu1 %v2541_v1 }
 0xa9e   :  { %2361 = vmatprep.mubr.msk.bf16.mxu0 %vm2542_vm0, %v2541_v1  ;;  %2358 = vmatpush3.bf16.msra.mxu0 %v2451_v37 }
 0xa9f   :  { %2359 = vmatprep.subr.bf16.mxu0 %v2541_v1 }
 0xaa2   :  { %2360 = vmatpush3.bf16.msra.mxu0 %v2452_v38 }
 0xaa3   :  { %2373 = vmatprep.subr.bf16.mxu0 %v2541_v1 }
 0xaa5   :  { %2362 = vmatmul.mubr.msk.bf16.vlgmr.msra.gmra.mrb[48].mxu0 %vm78_vm1, %v2637_v7 }
 0xaa6   :  { %2374 = vmatpush3.bf16.msra.mxu0 %v2453_v39  ;;  %2377 = vmatprep.mubr.msk.bf16.mxu0 %vm2542_vm0, %v2541_v1 }
 0xaa7   :  { %2375 = vmatprep.subr.bf16.mxu0 %v2541_v1 }
 0xaaa   :  { %2376 = vmatpush3.bf16.msra.mxu0 %v2454_v40 }
 0xaab   :  { %2387 = vmatprep.subr.bf16.mxu0 %v2541_v1 }
 0xaad   :  { %2378 = vmatmul.mubr.msk.bf16.vlgmr.msra.gmra.mrb[52].mxu0 %vm78_vm1, %v2637_v7 }
 0xaae   :  { %2389 = vmatprep.mubr.msk.bf16.mxu0 %vm2542_vm0, %v2541_v1 }
 0xb6e   :  { %v1350_v41 = vpop.f32.mrb[36].mxu1 }
 0xb6f   :  { %v2343_v42 = vpop.f32.mrb[37].mxu1 }
 0xb70   :  { %v1353_v43 = vpop.f32.mrb[38].mxu1  ;;  %v1396_v44 = vpop.f32.mrb[44].mxu0 }
 0xb71   :  { %v1402_v46 = vpack.c.bf16 %v1396_v44, %v1350_v41  ;;  %v2344_v47 = vpop.f32.mrb[39].mxu1  ;;  %v2349_v48 = vpop.f32.mrb[45].mxu0  ;;  %v2115_v43 = vld [vmem:[%s2994_s7 + $0xc] sm:$0xf] }
 0xb72   :  { %v1399_v49 = vpop.f32.mrb[46].mxu0  ;;  %v1876_v48 = vsel %vm379_vm3, %v2115_v43, 0 }
 0xb73   :  { %v2350_v50 = vpop.f32.mrb[47].mxu0  ;;  %2354 = vmatmul.mubr.msk.bf16.vlgmr.msra.gmra.mrb[12].mxu1 %vm255_vm2, %v1402_v46 }
 0xb74   :  { %2366 = vmatpush3.bf16.msra.mxu1 %v2449_v45  ;;  %2369 = vmatprep.mubr.msk.bf16.mxu1 %vm2542_vm0, %v2541_v1 }
 0xb75   :  { %2367 = vmatprep.subr.bf16.mxu1 %v2541_v1 }
 0xb78   :  { %2368 = vmatpush3.bf16.msra.mxu1 %v2450_v51  ;;  %v1513_v52 = vpop.f32.mrb[48].mxu0 }
 0xb79   :  { %2381 = vmatprep.subr.bf16.mxu1 %v2541_v1  ;;  %v2363_v53 = vpop.f32.mrb[49].mxu0  ;;  %v1514_v10 = vadd.f32 %v2089_v2, %v1513_v52 }
 0xb7a   :  { %v1516_v54 = vpop.f32.mrb[50].mxu0 }
 0xb7b   :  { %2370 = vmatmul.mubr.msk.bf16.vlgmr.msra.gmra.mrb[40].mxu1 %vm78_vm1, %v2637_v7  ;;  %v2364_v55 = vpop.f32.mrb[51].mxu0  ;;  %v2107_v7 = vld [vmem:[%s2993_s6 + $0x3] ss:$0 sm:$0xff]  ;;  %v1652_v14 = vpack.c.bf16 %v1514_v10, %v1514_v10  ;;  %v1517_v15 = vadd.f32 %v2089_v2, %v1516_v54 }
 0xb7c   :  { %2383 = vmatprep.mubr.msk.bf16.mxu1 %vm2542_vm0, %v2541_v1 }
 0xb7d   :  { %v1653_v18 = vpack.c.bf16 %v1517_v15, %v1517_v15 }
 0xb80   :  { %v1645_v56 = vpop.f32.mrb[52].mxu0 }
 0xb81   :  { %v2379_v57 = vpop.f32.mrb[53].mxu0  ;;  %v1646_v6 = vadd.f32 %v2107_v7, %v1645_v56 }
 0xb82   :  { %v1648_v58 = vpop.f32.mrb[54].mxu0 }
 0xb83   :  { %v2380_v59 = vpop.f32.mrb[55].mxu0  ;;  %v1649_v11 = vadd.f32 %v2107_v7, %v1648_v58  ;;  %v1775_v13 = vpack.c.bf16 %v1646_v6, %v1646_v6 }
 0xb84   :  { %v2000_v59 = vld [vmem:[%s2995_s8] ss:$0 sm:$0xff] }
 0xb85   :  { %v1776_v16 = vpack.c.bf16 %v1649_v11, %v1649_v11  ;;  %v1781_v17 = vsel %vm379_vm3, %v1775_v13, 0 }
 0xb87   :  { %v1827_v19 = vsel %vm379_vm3, %v1776_v16, 0 }
 0xc4e   :  { %v1579_v61 = vpop.f32.mrb[40].mxu1 }
 0xc4f   :  { %v1580_v62 = vadd.f32 %v2098_v60, %v1579_v61  ;;  %v2371_v63 = vpop.f32.mrb[41].mxu1  ;;  %v2492_v61 = vld [vmem:[%s2987_s0 + $0x8] sm:$0xff] }
 0xc50   :  { %v1582_v0 = vpop.f32.mrb[42].mxu1  ;;  %v54_v7 = vadd.f32 %v2492_v61, %v2000_v59 }
 0xc51   :  { %v1654_v3 = vpack.c.bf16 %v1580_v62, %v1580_v62  ;;  %v1583_v4 = vadd.f32 %v2098_v60, %v1582_v0  ;;  %v2372_v5 = vpop.f32.mrb[43].mxu1 }
 0xc53   :  { %v1660_v8 = vsel %vm255_vm2, %v1654_v3, 0  ;;  %v1655_v9 = vpack.c.bf16 %v1583_v4, %v1583_v4 }
 0xc54   :  { %2382 = vmatpush3.bf16.xpose.msra.mxu1 %v1660_v8 }
 0xc55   :  { %v1706_v12 = vsel %vm255_vm2, %v1655_v9, 0  ;;  %2393 = vmatprep.subr.bf16.mxu1 %v2541_v1 }
 0xc56   :  { %2388 = vmatpush3.bf16.xpose.msra.mxu0 %v1706_v12 }
 0xc57   :  { %2399 = vmatprep.subr.bf16.mxu0 %v2541_v1 }
 0xc5b   :  { %2384 = vmatmul.mubr.msk.bf16.vlgmr.msra.gmra.mrb[44].mxu1 %vm255_vm2, %v1652_v14 }
 0xc5c   :  { %2394 = vmatpush3.bf16.msra.mxu1 %v1781_v17  ;;  %2395 = vmatprep.mubr.msk.bf16.mxu1 %vm2542_vm0, %v2541_v1 }
 0xc5d   :  { %2390 = vmatmul.mubr.msk.bf16.vlgmr.msra.gmra.mrb[56].mxu0 %vm255_vm2, %v1653_v18  ;;  %2405 = vmatprep.subr.bf16.mxu1 %v2541_v1 }
 0xc5e   :  { %2400 = vmatpush3.bf16.msra.mxu0 %v1827_v19  ;;  %2401 = vmatprep.mubr.msk.bf16.mxu0 %vm2542_vm0, %v2541_v1 }
 0xd2e   :  { %v1696_v20 = vpop.f32.mrb[44].mxu1 }
 0xd2f   :  { %v2385_v21 = vpop.f32.mrb[45].mxu1  ;;  %v1748_v22 = vsel %vm255_vm2, %v1696_v20, -inf }
 0xd30   :  { %1749 = vmax.xlane.f32.xlu0 %v1748_v22  ;;  %v1699_v23 = vpop.f32.mrb[46].mxu1  ;;  %v1742_v24 = vpop.f32.mrb[56].mxu0 }
 0xd31   :  { %v2386_v25 = vpop.f32.mrb[47].mxu1  ;;  %v2391_v26 = vpop.f32.mrb[57].mxu0  ;;  %v1751_v27 = vsel %vm255_vm2, %v1742_v24, -inf }
 0xd32   :  { %1752 = vmax.xlane.f32.xlu1 %v1751_v27  ;;  %v1745_v28 = vpop.f32.mrb[58].mxu0 }
 0xd33   :  { %v2392_v29 = vpop.f32.mrb[59].mxu0 }
 0xdbd   :  { %v1750_v30 = vpop.xlane.xlu0 %1749 }
 0xdbe   :  { %v1754_v31 = vsub.f32 %v1696_v20, %v1750_v30 }
 0xdbf   :  { %v1753_v32 = vpop.xlane.xlu1 %1752 }
 0xdc0   :  { %v1756_v33 = vmul.f32 1.442695, %v1754_v31  ;;  %v1755_v34 = vsub.f32 %v1742_v24, %v1753_v32 }
 0xdc2   :  { %2479 = vpow2.f32 %v1756_v33  ;;  %v1758_v35 = vmul.f32 1.442695, %v1755_v34 }
 0xdc4   :  { %2481 = vpow2.f32 %v1758_v35 }
 0xdcc   :  { %v2480_v36 = vpop.eup %2479 }
 0xdcd   :  { %v1760_v37 = vsel %vm255_vm2, %v2480_v36, 0.0 }
 0xdce   :  { %v2482_v38 = vpop.eup %2481  ;;  %1761 = vadd.xlane.f32.xlu0 %v1760_v37 }
 0xdcf   :  { %v1763_v39 = vsel %vm255_vm2, %v2482_v38, 0.0 }
 0xdd0   :  { %1764 = vadd.xlane.f32.xlu1 %v1763_v39 }
 0xe5b   :  { %v1762_v40 = vpop.xlane.xlu0 %1761 }
 0xe5c   :  { %2483 = vrcp.f32 %v1762_v40 }
 0xe5d   :  { %v1765_v41 = vpop.xlane.xlu1 %1764 }
 0xe5e   :  { %2485 = vrcp.f32 %v1765_v41 }
 0xe66   :  { %v2484_v42 = vpop.eup %2483 }
 0xe67   :  { %v1767_v44 = vmul.f32 %v2484_v42, %v2480_v36 }
 0xe68   :  { %v2486_v45 = vpop.eup %2485 }
 0xe69   :  { %1771 = vst.msk [vmem:[#allocation4 + $0x30] sm:$0xff] %vm255_vm2, %v1767_v44  ;;  %v1769_v46 = vmul.f32 %v2486_v45, %v2482_v38  ;;  %v1773_v47 = vpack.c.bf16 %v1767_v44, %v1767_v44 }
 0xe6b   :  { %1772 = vst.msk [vmem:[#allocation4 + $0x38] sm:$0xff] %vm255_vm2, %v1769_v46  ;;  %2396 = vmatmul.mubr.msk.bf16.vlgmr.msra.gmra.mrb[48].mxu1 %vm255_vm2, %v1773_v47  ;;  %v1774_v49 = vpack.c.bf16 %v1769_v46, %v1769_v46 }
 0xe6c   :  { %2406 = vmatpush3.bf16.msra.mxu1 %v1876_v48  ;;  %2407 = vmatprep.mubr.msk.bf16.mxu1 %vm2542_vm0, %v2541_v1  ;;  %v2491_v1 = vld [vmem:[%s2987_s0] sm:$0xff]  ;;  %s2543_s0 = smov [#allocation4]  }
 0xe6d   :  { %2402 = vmatmul.mubr.msk.bf16.vlgmr.msra.gmra.mrb[60].mxu0 %vm255_vm2, %v1774_v49  ;;  %v53_v60 = vadd.f32 %v2491_v1, %v2000_v59  ;;  %s1985_s8 = sshll.u32 %s2543_s0, 4  ;;  %s1986_s8 = int_to_ptr.vmem [resolvable:$true] %s1985_s8 }
 0xe6e   :  { %s2493_s14 = scalar_lea.vmem %s1986_s8, 1024  ;;  %p2498_p1 = scmp.lt.s32.totalorder %s1986_s8, %s1986_s8 }
 0xe6f   :  { %p2494_p0 = scmp.ne.s32.totalorder %s1986_s8, %s2493_s14  ;;  %p2499_p2 = scmp.lt.s32.totalorder %s2493_s14, %s2493_s14 }
 0xe71   :  { %p2500_p3 = por %p2499_p2, %p2498_p1 }
 0xe73   :  { %p2501_p4 = pnand %p2500_p3, %p2494_p0 }
 0xf3e   :  { %v1817_v50 = vpop.f32.mrb[48].mxu1 }
 0xf3f   :  { %v2397_v51 = vpop.f32.mrb[49].mxu1 }
 0xf40   :  { %v1820_v52 = vpop.f32.mrb[50].mxu1  ;;  %v1863_v53 = vpop.f32.mrb[60].mxu0 }
 0xf41   :  { %v1869_v54 = vpack.c.bf16 %v1863_v53, %v1817_v50  ;;  %v2398_v55 = vpop.f32.mrb[51].mxu1  ;;  %v2403_v56 = vpop.f32.mrb[61].mxu0 }
 0xf42   :  { %v1866_v57 = vpop.f32.mrb[62].mxu0 }
 0xf43   :  { %v2404_v58 = vpop.f32.mrb[63].mxu0  ;;  %2408 = vmatmul.mubr.msk.bf16.vlgmr.msra.gmra.mrb[12].mxu1 %vm255_vm2, %v1869_v54 }
0x1016   :  { %v1912_v62 = vpop.f32.mrb[12].mxu1 }
0x1017   :  { %v2411_v63 = vadd.f32 %v1912_v62, %v53_v60  ;;  %v2409_v0 = vpop.f32.mrb[13].mxu1 }
0x1018   :  { %v1915_v2 = vpop.f32.mrb[14].mxu1 }
0x1019   :  { %v2412_v3 = vadd.f32 %v1915_v2, %v54_v7  ;;  %v2410_v4 = vpop.f32.mrb[15].mxu1  ;;  %v1923_v5 = vsel %vm78_vm1, %v2411_v63, 0.0 }
0x101a   :  { %1924 = vadd.xlane.f32.xlu0 %v1923_v5 }
0x101b   :  { %v1926_v6 = vsel %vm78_vm1, %v2412_v3, 0.0 }
0x101c   :  { %1927 = vadd.xlane.f32.xlu1 %v1926_v6 }
0x10a7   :  { %v1925_v8 = vpop.xlane.xlu0 %1924 }
0x10a8   :  { %v1930_v9 = vmul.f32 0.03125, %v1925_v8 }
0x10a9   :  { %v1928_v10 = vpop.xlane.xlu1 %1927 }
0x10aa   :  { %v1932_v11 = vsub.f32 %v2411_v63, %v1930_v9  ;;  %v1931_v12 = vmul.f32 0.03125, %v1928_v10 }
0x10ac   :  { %v1933_v13 = vsub.f32 %v2412_v3, %v1931_v12  ;;  %v1934_v14 = vmul.f32 %v1932_v11, %v1932_v11 }
0x10ae   :  { %v1936_v15 = vsel %vm78_vm1, %v1934_v14, 0.0  ;;  %v1935_v16 = vmul.f32 %v1933_v13, %v1933_v13 }
0x10af   :  { %1937 = vadd.xlane.f32.xlu0 %v1936_v15 }
0x10b0   :  { %v1939_v17 = vsel %vm78_vm1, %v1935_v16, 0.0 }
0x10b1   :  { %1940 = vadd.xlane.f32.xlu1 %v1939_v17 }
0x10b2   :  { %2504 = shalt.err (!%p2501_p4)
}
0x10b3   :  { %s2505_s17 = scalar_lea.hbm %s2999_s12, 1024 }
0x10b4   :  { %p2506_p5 = scmp.ne.s32.totalorder %s2999_s12, %s2505_s17  ;;  %p2509_p6 = scmp.lt.u32.totalorder %s2505_s17, %s2999_s12 }
0x10b6   :  { %p2511_p7 = pnand %p2509_p6, %p2506_p5 }
0x10b8   :  { %2514 = shalt.err (!%p2511_p7)
}
0x10b9   :  { %s2544_s5 = smov 128   ;;  %s2545_s21 = smov 8   ;;  %v2117_v25 = vld [vmem:[%s2996_s9] ss:$0 sm:$0xff] }
0x10ba   :  { %1991 = dma.vmem_to_hbm [thread:$0]  %s1986_s8, 1024, %s2999_s12, [#allocation5], %s2544_s5, %s2544_s5, %s2545_s21  }
0x10bb   :  { %v2118_v28 = vld [vmem:[%s2997_s10] ss:$0 sm:$0xff]  ;;  %s2546_s12 = smov [#allocation2]  }
0x10bc   :  { %s1973_s27 = sshll.u32 %s2546_s12, 4  ;;  %s1974_s27 = int_to_ptr.vmem [resolvable:$true] %s1973_s27 }
0x10bd   :  { %s2515_s2 = scalar_lea.vmem %s1974_s27, 256  ;;  %p2520_p9 = scmp.lt.s32.totalorder %s1974_s27, %s1974_s27 }
0x10be   :  { %p2516_p8 = scmp.ne.s32.totalorder %s1974_s27, %s2515_s2  ;;  %p2521_p10 = scmp.lt.s32.totalorder %s2515_s2, %s2515_s2 }
0x10c0   :  { %p2522_p11 = por %p2521_p10, %p2520_p9 }
0x10c2   :  { %p2523_p12 = pnand %p2522_p11, %p2516_p8 }
0x113c   :  { %v1938_v18 = vpop.xlane.xlu0 %1937 }
0x113d   :  { %v1942_v19 = vmul.f32 0.03125, %v1938_v18 }
0x113e   :  { %v1941_v20 = vpop.xlane.xlu1 %1940 }
0x113f   :  { %v1944_v21 = vadd.f32 1e-12, %v1942_v19  ;;  %v1943_v22 = vmul.f32 0.03125, %v1941_v20 }
0x1141   :  { %2487 = vrsqrt.f32 %v1944_v21  ;;  %v1945_v23 = vadd.f32 1e-12, %v1943_v22 }
0x1143   :  { %2489 = vrsqrt.f32 %v1945_v23 }
0x114b   :  { %v2488_v24 = vpop.eup %2487 }
0x114c   :  { %v1948_v26 = vmul.f32 %v2488_v24, %v1932_v11 }
0x114d   :  { %v2490_v27 = vpop.eup %2489 }
0x114e   :  { %v1949_v29 = vmul.f32 %v2490_v27, %v1933_v13  ;;  %v1956_v30 = vmul.f32 %v2117_v25, %v1948_v26 }
0x1150   :  { %v1957_v31 = vmul.f32 %v2117_v25, %v1949_v29  ;;  %v1964_v32 = vadd.f32 %v2118_v28, %v1956_v30 }
0x1152   :  { %v1965_v33 = vadd.f32 %v2118_v28, %v1957_v31  ;;  %1966 = vst.msk [vmem:[#allocation2] sm:$0xff] %vm78_vm1, %v1964_v32 }
0x1154   :  { %1967 = vst.msk [vmem:[#allocation2 + $0x8] sm:$0xff] %vm78_vm1, %v1965_v33 }
0x1155   :  { %2526 = shalt.err (!%p2523_p12)
}
0x1156   :  { %s2527_s4 = scalar_lea.hbm %s2998_s11, 256 }
0x1157   :  { %p2528_p13 = scmp.ne.s32.totalorder %s2998_s11, %s2527_s4  ;;  %p2531_p0 = scmp.lt.u32.totalorder %s2527_s4, %s2998_s11 }
0x1159   :  { %p2533_p1 = pnand %p2531_p0, %p2528_p13 }
0x115b   :  { %2536 = shalt.err (!%p2533_p1)
}
0x115c   :  { %1979 = dma.vmem_to_hbm [thread:$0]  %s1974_s27, 256, %s2998_s11, [#allocation3], %s2544_s5, %s2544_s5, %s2545_s21  }
0x115d   :  { %2537 = dma.done.wait [#allocation3], 256  }
0x115e   :  { %2538 = vsyncadd [#allocation3], 4294967040 }
0x115f   :  { %2539 = dma.done.wait [#allocation5], 1024  }
0x1160   :  { %2540 = vsyncadd [#allocation5], 4294966272 }
0x1161   :  { %1998 = vsyncpa [#allocation3], 1 }
0x1162   :  { %1999 = vsyncpa [#allocation5], 1 }

</bundles_post_ra>
